<compile_context>
chip_gen: v6e
topology: v6e:2x2x1
jax: 0.10.0
libtpu: 0.0.40
codegen_flags: <defaults>
</compile_context>

<pallas_src>
import functools
import math

import jax
import jax.numpy as jnp
from jax.experimental import pallas as pl
from jax.experimental.pallas import tpu as pltpu


_VMEM_BUDGET_BYTES = 48 * 1024 * 1024     # conservative: fits v7x's 64 MiB / TC


def _sigmoid(x):
    # Exact sigmoid identity using a single EUP op (tanh) instead of exp + recip.
    return 0.5 * jnp.tanh(0.5 * x) + 0.5


def _vmem_bytes(bc, tc, isz, hidden):
    """Rough per-core VMEM footprint of one fused chunk."""
    g = 4 * hidden
    return (isz * g * 2                    # resident W_ih^T (bf16)
            + hidden * g * 2               # resident W_hh^T (bf16)
            + g * 4                        # fused bias (f32)
            + 2 * bc * tc * isz * 4        # double-buffered x tile (f32)
            + 2 * bc * tc * hidden * 4     # double-buffered out tile (f32)
            + bc * tc * g * 4              # in-kernel gate chunk value (f32)
            + 4 * bc * hidden * 4)         # h/c scratch + slack


def _pick_batch_chunk(batch):
    # Split the independent sequences across the two v7x TensorCores when the
    # batch is large enough; otherwise a single chunk (grid axis of size 1).
    if batch >= 16 and batch % 2 == 0:
        return batch // 2
    return batch


def _pick_time_chunk(seq, bc, isz, hidden):
    # Largest 8-aligned chunk that divides T and fits the VMEM budget; short or
    # ragged sequences fall back to a single chunk (block == full time dim).
    for tc in (128, 64, 32, 16, 8):
        if seq % tc == 0 and _vmem_bytes(bc, tc, isz, hidden) <= _VMEM_BUDGET_BYTES:
            return tc
    return seq


# --------------------------------------------------------------------------------------
# Fused LSTM layer kernel: per grid step, one tall MXU input projection for the
# whole time chunk + Tc unrolled recurrence steps.  Grid = (B//Bc, T//Tc).
# --------------------------------------------------------------------------------------
def _lstm_chunk_kernel(x_ref, wih_ref, whh_ref, b_ref, o_ref, h_ref, c_ref,
                       *, hidden, tc):
    """x_ref: (Bc,Tc,I) f32 | wih_ref: (I,4H) bf16 | whh_ref: (H,4H) bf16 |
    b_ref: (1,4H) f32 | o_ref: (Bc,Tc,H) f32 | h_ref/c_ref: (Bc,H) f32 carry."""
    @pl.when(pl.program_id(1) == 0)                 # first time chunk: h0 = c0 = 0
    def _():
        h_ref[...] = jnp.zeros_like(h_ref)
        c_ref[...] = jnp.zeros_like(c_ref)

    bc, _, isz = x_ref.shape
    g = 4 * hidden

    # Fused chunk input projection: one tall, lane-dense MXU matmul
    # (Bc*Tc, I) @ (I, 4H), bf16 operands, f32 accumulation, bias folded in.
    x_rows = x_ref[...].astype(jnp.bfloat16).reshape(bc * tc, isz)
    xw = jnp.dot(x_rows, wih_ref[...], preferred_element_type=jnp.float32)
    xw = xw.reshape(bc, tc, g) + b_ref[...]

    whh = whh_ref[...]
    h = h_ref[...]
    c = c_ref[...]
    for t in range(tc):                             # fully unrolled recurrence
        gates = xw[:, t, :] + jnp.dot(h.astype(jnp.bfloat16), whh,
                                      preferred_element_type=jnp.float32)
        # PyTorch packed gate order: input, forget, cell(g), output.
        i_g = _sigmoid(gates[:, 0 * hidden:1 * hidden])
        f_g = _sigmoid(gates[:, 1 * hidden:2 * hidden])
        g_g = jnp.tanh(gates[:, 2 * hidden:3 * hidden])
        o_g = _sigmoid(gates[:, 3 * hidden:4 * hidden])
        c = f_g * c + i_g * g_g
        h = o_g * jnp.tanh(c)
        # NOTE: for hidden < 128 (the test case) this is a masked store; lane-
        # dense for hidden >= 128.
        o_ref[:, t:t + 1, :] = h.reshape(bc, 1, hidden).astype(o_ref.dtype)

    h_ref[...] = h                                  # carry into next time chunk
    c_ref[...] = c


def _lstm_layer(x, w_ih, w_hh, b_ih, b_hh):
    """One unidirectional LSTM layer, batch-first.  x: (B, T, I) -> (B, T, H)."""
    B, T, I = x.shape
    H = w_hh.shape[1]
    G = 4 * H

    Bc = _pick_batch_chunk(B)
    Tc = _pick_time_chunk(T, Bc, I, H)

    wih_t = jnp.transpose(w_ih).astype(jnp.bfloat16)          # (I, 4H)
    whh_t = jnp.transpose(w_hh).astype(jnp.bfloat16)          # (H, 4H)
    bias = (b_ih + b_hh).astype(jnp.float32).reshape(1, G)    # fused bias

    vmem_limit = int(min(64 * 1024 * 1024,
                         max(16 * 1024 * 1024, 2 * _vmem_bytes(Bc, Tc, I, H))))

    return pl.pallas_call(
        functools.partial(_lstm_chunk_kernel, hidden=H, tc=Tc),
        out_shape=jax.ShapeDtypeStruct((B, T, H), jnp.float32),
        grid=(B // Bc, T // Tc),
        in_specs=[
            pl.BlockSpec((Bc, Tc, I), lambda b, c: (b, c, 0)),   # x tile (batch-first)
            pl.BlockSpec((I, G), lambda b, c: (0, 0)),           # W_ih^T resident
            pl.BlockSpec((H, G), lambda b, c: (0, 0)),           # W_hh^T resident
            pl.BlockSpec((1, G), lambda b, c: (0, 0)),           # fused bias resident
        ],
        out_specs=pl.BlockSpec((Bc, Tc, H), lambda b, c: (b, c, 0)),
        scratch_shapes=[
            pltpu.VMEM((Bc, H), jnp.float32),                    # h carry
            pltpu.VMEM((Bc, H), jnp.float32),                    # c carry
        ],
        compiler_params=pltpu.CompilerParams(
            dimension_semantics=("parallel", "arbitrary"),       # batch || , time seq
            vmem_limit_bytes=vmem_limit),
    )(x.astype(jnp.float32), wih_t, whh_t, bias)


def lstm_forward(x, params):
    """x: (B, T, input_size); params: list (one dict per layer) of
    {w_ih: (4H, I), w_hh: (4H, H), b_ih: (4H,), b_hh: (4H,)}.  Returns (B, T, H)."""
    out = x
    for layer in params:
        out = _lstm_layer(out, layer["w_ih"], layer["w_hh"],
                          layer["b_ih"], layer["b_hh"])
    return out


# --------------------------------------------------------------------------------------
# Pure-JAX f32 reference (lax.scan) for correctness checking.
# --------------------------------------------------------------------------------------
def reference_lstm(x, params):
    out = x.astype(jnp.float32)
    for layer in params:
        w_ih, w_hh = layer["w_ih"], layer["w_hh"]
        b = layer["b_ih"] + layer["b_hh"]
        B, T, _ = out.shape
        H = w_hh.shape[1]

        def step(carry, x_t):
            h, c = carry
            gates = x_t @ w_ih.T + h @ w_hh.T + b
            i = jax.nn.sigmoid(gates[:, 0 * H:1 * H])
            f = jax.nn.sigmoid(gates[:, 1 * H:2 * H])
            g = jnp.tanh(gates[:, 2 * H:3 * H])
            o = jax.nn.sigmoid(gates[:, 3 * H:4 * H])
            c = f * c + i * g
            h = o * jnp.tanh(c)
            return (h, c), h

        h0 = jnp.zeros((B, H), jnp.float32)
        c0 = jnp.zeros((B, H), jnp.float32)
        (_, _), hs = jax.lax.scan(step, (h0, c0), jnp.transpose(out, (1, 0, 2)))
        out = jnp.transpose(hs, (1, 0, 2))
    return out


if __name__ == "__main__":
    # Small shapes consistent with the module: batch=2, seq=8, input=16, hidden=32.
    B, T, I, H = 2, 8, 16, 32

    key = jax.random.PRNGKey(0)
    ks = jax.random.split(key, 5)
    x = jax.random.normal(ks[0], (B, T, I), jnp.float32)

    bound = 1.0 / math.sqrt(H)                 # PyTorch default U(-1/sqrt(H), 1/sqrt(H))
    params = [{
        "w_ih": jax.random.uniform(ks[1], (4 * H, I), jnp.float32, -bound, bound),
        "w_hh": jax.random.uniform(ks[2], (4 * H, H), jnp.float32, -bound, bound),
        "b_ih": jax.random.uniform(ks[3], (4 * H,), jnp.float32, -bound, bound),
        "b_hh": jax.random.uniform(ks[4], (4 * H,), jnp.float32, -bound, bound),
    }]

    out = jax.block_until_ready(lstm_forward(x, params))
    ref = jax.block_until_ready(reference_lstm(x, params))

    assert out.shape == (B, T, H), out.shape
    max_err = float(jnp.max(jnp.abs(out - ref)))
    # bf16 MXU operands vs the all-f32 reference: loose tolerance.
    if max_err > 3e-2:
        raise RuntimeError(f"Pallas LSTM mismatch vs reference, max_err={max_err}")

    print("KERNEL_OK")
</pallas_src>

<mosaic_0001>
module attributes {stable_mosaic.version = 11 : i64} {
  func.func @_lstm_chunk_kernel(%arg0: i32, %arg1: i32, %arg2: memref<2x8x16xf32, #tpu.memory_space<vmem>>, %arg3: memref<16x128xbf16, #tpu.memory_space<vmem>>, %arg4: memref<32x128xbf16, #tpu.memory_space<vmem>>, %arg5: memref<1x128xf32, #tpu.memory_space<vmem>>, %arg6: memref<2x8x32xf32, #tpu.memory_space<vmem>>, %arg7: memref<2x32xf32, #tpu.memory_space<vmem>>, %arg8: memref<2x32xf32, #tpu.memory_space<vmem>>) attributes {dimension_semantics = [#tpu.dimension_semantics<parallel>, #tpu.dimension_semantics<arbitrary>], iteration_bounds = array<i64: 1, 1>, scalar_prefetch = 0 : i64, scratch_operands = 2 : i64, tpu.core_type = #tpu.core_type<tc>, window_params = [{transform_indices = @transform_0, window_bounds = array<i64: 2, 8, 16>}, {pipeline_mode = #tpu.pipeline_mode<synchronous>, transform_indices = @transform_1, window_bounds = array<i64: 16, 128>}, {pipeline_mode = #tpu.pipeline_mode<synchronous>, transform_indices = @transform_2, window_bounds = array<i64: 32, 128>}, {pipeline_mode = #tpu.pipeline_mode<synchronous>, transform_indices = @transform_3, window_bounds = array<i64: 1, 128>}, {transform_indices = @transform_4, window_bounds = array<i64: 2, 8, 32>}]} {
    %c0_i32 = arith.constant 0 : i32
    %0 = arith.cmpi eq, %arg1, %c0_i32 : i32
    %1 = arith.extui %0 : i1 to i32
    %c0_i32_0 = arith.constant 0 : i32
    %2 = arith.cmpi ne, %1, %c0_i32_0 : i32
    scf.if %2 {
      %cst_114 = arith.constant 0.000000e+00 : f32
      %322 = vector.broadcast %cst_114 : f32 to vector<2x32xf32>
      %c0_115 = arith.constant 0 : index
      %c0_116 = arith.constant 0 : index
      %323 = vector.load %arg7[%c0_115, %c0_116] : memref<2x32xf32, #tpu.memory_space<vmem>>, vector<2x32xf32>
      tpu.vector_store %arg7[%c0_115, %c0_116], %322 {strides = array<i32>} : memref<2x32xf32, #tpu.memory_space<vmem>>, vector<2x32xf32>,
      %cst_117 = arith.constant 0.000000e+00 : f32
      %324 = vector.broadcast %cst_117 : f32 to vector<2x32xf32>
      %c0_118 = arith.constant 0 : index
      %c0_119 = arith.constant 0 : index
      %325 = vector.load %arg8[%c0_118, %c0_119] : memref<2x32xf32, #tpu.memory_space<vmem>>, vector<2x32xf32>
      tpu.vector_store %arg8[%c0_118, %c0_119], %324 {strides = array<i32>} : memref<2x32xf32, #tpu.memory_space<vmem>>, vector<2x32xf32>,
    } else {
    }
    %c0 = arith.constant 0 : index
    %c0_1 = arith.constant 0 : index
    %c0_2 = arith.constant 0 : index
    %3 = vector.load %arg2[%c0, %c0_1, %c0_2] : memref<2x8x16xf32, #tpu.memory_space<vmem>>, vector<2x8x16xf32>
    %4 = arith.truncf %3 : vector<2x8x16xf32> to vector<2x8x16xbf16>
    %5 = vector.shape_cast %4 : vector<2x8x16xbf16> to vector<16x16xbf16>
    %c0_3 = arith.constant 0 : index
    %c0_4 = arith.constant 0 : index
    %6 = vector.load %arg3[%c0_3, %c0_4] : memref<16x128xbf16, #tpu.memory_space<vmem>>, vector<16x128xbf16>
    %cst = arith.constant dense<0.000000e+00> : vector<16x128xf32>
    %7 = tpu.matmul %5, %6, %cst {dimension_numbers = #tpu.dot_dimension_numbers<[1], [0], [0], [1], [0, 0, 1, 1], [], []>} : vector<16x16xbf16>, vector<16x128xbf16>, vector<16x128xf32> -> vector<16x128xf32>
    %8 = vector.shape_cast %7 : vector<16x128xf32> to vector<2x8x128xf32>
    %c0_5 = arith.constant 0 : index
    %c0_6 = arith.constant 0 : index
    %9 = vector.load %arg5[%c0_5, %c0_6] : memref<1x128xf32, #tpu.memory_space<vmem>>, vector<1x128xf32>
    %10 = vector.shape_cast %9 : vector<1x128xf32> to vector<1x1x128xf32>
    %11 = vector.broadcast %10 : vector<1x1x128xf32> to vector<2x8x128xf32>
    %12 = arith.addf %8, %11 : vector<2x8x128xf32>
    %c0_7 = arith.constant 0 : index
    %c0_8 = arith.constant 0 : index
    %13 = vector.load %arg4[%c0_7, %c0_8] : memref<32x128xbf16, #tpu.memory_space<vmem>>, vector<32x128xbf16>
    %c0_9 = arith.constant 0 : index
    %c0_10 = arith.constant 0 : index
    %14 = vector.load %arg7[%c0_9, %c0_10] : memref<2x32xf32, #tpu.memory_space<vmem>>, vector<2x32xf32>
    %c0_11 = arith.constant 0 : index
    %c0_12 = arith.constant 0 : index
    %15 = vector.load %arg8[%c0_11, %c0_12] : memref<2x32xf32, #tpu.memory_space<vmem>>, vector<2x32xf32>
    %16 = vector.extract_strided_slice %12 {offsets = [0, 0, 0], sizes = [2, 1, 128], strides = [1, 1, 1]} : vector<2x8x128xf32> to vector<2x1x128xf32>
    %17 = vector.shape_cast %16 : vector<2x1x128xf32> to vector<2x128xf32>
    %18 = arith.truncf %14 : vector<2x32xf32> to vector<2x32xbf16>
    %cst_13 = arith.constant dense<0.000000e+00> : vector<2x128xf32>
    %19 = tpu.matmul %18, %13, %cst_13 {dimension_numbers = #tpu.dot_dimension_numbers<[1], [0], [0], [1], [0, 0, 1, 1], [], []>} : vector<2x32xbf16>, vector<32x128xbf16>, vector<2x128xf32> -> vector<2x128xf32>
    %20 = arith.addf %17, %19 : vector<2x128xf32>
    %21 = vector.extract_strided_slice %20 {offsets = [0, 0], sizes = [2, 32], strides = [1, 1]} : vector<2x128xf32> to vector<2x32xf32>
    %cst_14 = arith.constant 5.000000e-01 : f32
    %22 = vector.broadcast %cst_14 : f32 to vector<2x32xf32>
    %23 = arith.mulf %22, %21 : vector<2x32xf32>
    %24 = math.tanh %23 : vector<2x32xf32>
    %cst_15 = arith.constant 5.000000e-01 : f32
    %25 = vector.broadcast %cst_15 : f32 to vector<2x32xf32>
    %26 = arith.mulf %25, %24 : vector<2x32xf32>
    %cst_16 = arith.constant 5.000000e-01 : f32
    %27 = vector.broadcast %cst_16 : f32 to vector<2x32xf32>
    %28 = arith.addf %26, %27 : vector<2x32xf32>
    %29 = vector.extract_strided_slice %20 {offsets = [0, 32], sizes = [2, 32], strides = [1, 1]} : vector<2x128xf32> to vector<2x32xf32>
    %cst_17 = arith.constant 5.000000e-01 : f32
    %30 = vector.broadcast %cst_17 : f32 to vector<2x32xf32>
    %31 = arith.mulf %30, %29 : vector<2x32xf32>
    %32 = math.tanh %31 : vector<2x32xf32>
    %cst_18 = arith.constant 5.000000e-01 : f32
    %33 = vector.broadcast %cst_18 : f32 to vector<2x32xf32>
    %34 = arith.mulf %33, %32 : vector<2x32xf32>
    %cst_19 = arith.constant 5.000000e-01 : f32
    %35 = vector.broadcast %cst_19 : f32 to vector<2x32xf32>
    %36 = arith.addf %34, %35 : vector<2x32xf32>
    %37 = vector.extract_strided_slice %20 {offsets = [0, 64], sizes = [2, 32], strides = [1, 1]} : vector<2x128xf32> to vector<2x32xf32>
    %38 = math.tanh %37 : vector<2x32xf32>
    %39 = vector.extract_strided_slice %20 {offsets = [0, 96], sizes = [2, 32], strides = [1, 1]} : vector<2x128xf32> to vector<2x32xf32>
    %cst_20 = arith.constant 5.000000e-01 : f32
    %40 = vector.broadcast %cst_20 : f32 to vector<2x32xf32>
    %41 = arith.mulf %40, %39 : vector<2x32xf32>
    %42 = math.tanh %41 : vector<2x32xf32>
    %cst_21 = arith.constant 5.000000e-01 : f32
    %43 = vector.broadcast %cst_21 : f32 to vector<2x32xf32>
    %44 = arith.mulf %43, %42 : vector<2x32xf32>
    %cst_22 = arith.constant 5.000000e-01 : f32
    %45 = vector.broadcast %cst_22 : f32 to vector<2x32xf32>
    %46 = arith.addf %44, %45 : vector<2x32xf32>
    %47 = arith.mulf %36, %15 : vector<2x32xf32>
    %48 = arith.mulf %28, %38 : vector<2x32xf32>
    %49 = arith.addf %47, %48 : vector<2x32xf32>
    %50 = math.tanh %49 : vector<2x32xf32>
    %51 = arith.mulf %46, %50 : vector<2x32xf32>
    %52 = vector.shape_cast %51 : vector<2x32xf32> to vector<2x1x32xf32>
    %c0_23 = arith.constant 0 : index
    %c0_24 = arith.constant 0 : index
    %c0_25 = arith.constant 0 : index
    %53 = vector.load %arg6[%c0_23, %c0_24, %c0_25] : memref<2x8x32xf32, #tpu.memory_space<vmem>>, vector<2x1x32xf32>
    tpu.vector_store %arg6[%c0_23, %c0_24, %c0_25], %52 {strides = array<i32>} : memref<2x8x32xf32, #tpu.memory_space<vmem>>, vector<2x1x32xf32>,
    %54 = vector.extract_strided_slice %12 {offsets = [0, 1, 0], sizes = [2, 1, 128], strides = [1, 1, 1]} : vector<2x8x128xf32> to vector<2x1x128xf32>
    %55 = vector.shape_cast %54 : vector<2x1x128xf32> to vector<2x128xf32>
    %56 = arith.truncf %51 : vector<2x32xf32> to vector<2x32xbf16>
    %cst_26 = arith.constant dense<0.000000e+00> : vector<2x128xf32>
    %57 = tpu.matmul %56, %13, %cst_26 {dimension_numbers = #tpu.dot_dimension_numbers<[1], [0], [0], [1], [0, 0, 1, 1], [], []>} : vector<2x32xbf16>, vector<32x128xbf16>, vector<2x128xf32> -> vector<2x128xf32>
    %58 = arith.addf %55, %57 : vector<2x128xf32>
    %59 = vector.extract_strided_slice %58 {offsets = [0, 0], sizes = [2, 32], strides = [1, 1]} : vector<2x128xf32> to vector<2x32xf32>
    %cst_27 = arith.constant 5.000000e-01 : f32
    %60 = vector.broadcast %cst_27 : f32 to vector<2x32xf32>
    %61 = arith.mulf %60, %59 : vector<2x32xf32>
    %62 = math.tanh %61 : vector<2x32xf32>
    %cst_28 = arith.constant 5.000000e-01 : f32
    %63 = vector.broadcast %cst_28 : f32 to vector<2x32xf32>
    %64 = arith.mulf %63, %62 : vector<2x32xf32>
    %cst_29 = arith.constant 5.000000e-01 : f32
    %65 = vector.broadcast %cst_29 : f32 to vector<2x32xf32>
    %66 = arith.addf %64, %65 : vector<2x32xf32>
    %67 = vector.extract_strided_slice %58 {offsets = [0, 32], sizes = [2, 32], strides = [1, 1]} : vector<2x128xf32> to vector<2x32xf32>
    %cst_30 = arith.constant 5.000000e-01 : f32
    %68 = vector.broadcast %cst_30 : f32 to vector<2x32xf32>
    %69 = arith.mulf %68, %67 : vector<2x32xf32>
    %70 = math.tanh %69 : vector<2x32xf32>
    %cst_31 = arith.constant 5.000000e-01 : f32
    %71 = vector.broadcast %cst_31 : f32 to vector<2x32xf32>
    %72 = arith.mulf %71, %70 : vector<2x32xf32>
    %cst_32 = arith.constant 5.000000e-01 : f32
    %73 = vector.broadcast %cst_32 : f32 to vector<2x32xf32>
    %74 = arith.addf %72, %73 : vector<2x32xf32>
    %75 = vector.extract_strided_slice %58 {offsets = [0, 64], sizes = [2, 32], strides = [1, 1]} : vector<2x128xf32> to vector<2x32xf32>
    %76 = math.tanh %75 : vector<2x32xf32>
    %77 = vector.extract_strided_slice %58 {offsets = [0, 96], sizes = [2, 32], strides = [1, 1]} : vector<2x128xf32> to vector<2x32xf32>
    %cst_33 = arith.constant 5.000000e-01 : f32
    %78 = vector.broadcast %cst_33 : f32 to vector<2x32xf32>
    %79 = arith.mulf %78, %77 : vector<2x32xf32>
    %80 = math.tanh %79 : vector<2x32xf32>
    %cst_34 = arith.constant 5.000000e-01 : f32
    %81 = vector.broadcast %cst_34 : f32 to vector<2x32xf32>
    %82 = arith.mulf %81, %80 : vector<2x32xf32>
    %cst_35 = arith.constant 5.000000e-01 : f32
    %83 = vector.broadcast %cst_35 : f32 to vector<2x32xf32>
    %84 = arith.addf %82, %83 : vector<2x32xf32>
    %85 = arith.mulf %74, %49 : vector<2x32xf32>
    %86 = arith.mulf %66, %76 : vector<2x32xf32>
    %87 = arith.addf %85, %86 : vector<2x32xf32>
    %88 = math.tanh %87 : vector<2x32xf32>
    %89 = arith.mulf %84, %88 : vector<2x32xf32>
    %90 = vector.shape_cast %89 : vector<2x32xf32> to vector<2x1x32xf32>
    %c0_36 = arith.constant 0 : index
    %c1 = arith.constant 1 : index
    %c0_37 = arith.constant 0 : index
    %91 = vector.load %arg6[%c0_36, %c1, %c0_37] : memref<2x8x32xf32, #tpu.memory_space<vmem>>, vector<2x1x32xf32>
    tpu.vector_store %arg6[%c0_36, %c1, %c0_37], %90 {strides = array<i32>} : memref<2x8x32xf32, #tpu.memory_space<vmem>>, vector<2x1x32xf32>,
    %92 = vector.extract_strided_slice %12 {offsets = [0, 2, 0], sizes = [2, 1, 128], strides = [1, 1, 1]} : vector<2x8x128xf32> to vector<2x1x128xf32>
    %93 = vector.shape_cast %92 : vector<2x1x128xf32> to vector<2x128xf32>
    %94 = arith.truncf %89 : vector<2x32xf32> to vector<2x32xbf16>
    %cst_38 = arith.constant dense<0.000000e+00> : vector<2x128xf32>
    %95 = tpu.matmul %94, %13, %cst_38 {dimension_numbers = #tpu.dot_dimension_numbers<[1], [0], [0], [1], [0, 0, 1, 1], [], []>} : vector<2x32xbf16>, vector<32x128xbf16>, vector<2x128xf32> -> vector<2x128xf32>
    %96 = arith.addf %93, %95 : vector<2x128xf32>
    %97 = vector.extract_strided_slice %96 {offsets = [0, 0], sizes = [2, 32], strides = [1, 1]} : vector<2x128xf32> to vector<2x32xf32>
    %cst_39 = arith.constant 5.000000e-01 : f32
    %98 = vector.broadcast %cst_39 : f32 to vector<2x32xf32>
    %99 = arith.mulf %98, %97 : vector<2x32xf32>
    %100 = math.tanh %99 : vector<2x32xf32>
    %cst_40 = arith.constant 5.000000e-01 : f32
    %101 = vector.broadcast %cst_40 : f32 to vector<2x32xf32>
    %102 = arith.mulf %101, %100 : vector<2x32xf32>
    %cst_41 = arith.constant 5.000000e-01 : f32
    %103 = vector.broadcast %cst_41 : f32 to vector<2x32xf32>
    %104 = arith.addf %102, %103 : vector<2x32xf32>
    %105 = vector.extract_strided_slice %96 {offsets = [0, 32], sizes = [2, 32], strides = [1, 1]} : vector<2x128xf32> to vector<2x32xf32>
    %cst_42 = arith.constant 5.000000e-01 : f32
    %106 = vector.broadcast %cst_42 : f32 to vector<2x32xf32>
    %107 = arith.mulf %106, %105 : vector<2x32xf32>
    %108 = math.tanh %107 : vector<2x32xf32>
    %cst_43 = arith.constant 5.000000e-01 : f32
    %109 = vector.broadcast %cst_43 : f32 to vector<2x32xf32>
    %110 = arith.mulf %109, %108 : vector<2x32xf32>
    %cst_44 = arith.constant 5.000000e-01 : f32
    %111 = vector.broadcast %cst_44 : f32 to vector<2x32xf32>
    %112 = arith.addf %110, %111 : vector<2x32xf32>
    %113 = vector.extract_strided_slice %96 {offsets = [0, 64], sizes = [2, 32], strides = [1, 1]} : vector<2x128xf32> to vector<2x32xf32>
    %114 = math.tanh %113 : vector<2x32xf32>
    %115 = vector.extract_strided_slice %96 {offsets = [0, 96], sizes = [2, 32], strides = [1, 1]} : vector<2x128xf32> to vector<2x32xf32>
    %cst_45 = arith.constant 5.000000e-01 : f32
    %116 = vector.broadcast %cst_45 : f32 to vector<2x32xf32>
    %117 = arith.mulf %116, %115 : vector<2x32xf32>
    %118 = math.tanh %117 : vector<2x32xf32>
    %cst_46 = arith.constant 5.000000e-01 : f32
    %119 = vector.broadcast %cst_46 : f32 to vector<2x32xf32>
    %120 = arith.mulf %119, %118 : vector<2x32xf32>
    %cst_47 = arith.constant 5.000000e-01 : f32
    %121 = vector.broadcast %cst_47 : f32 to vector<2x32xf32>
    %122 = arith.addf %120, %121 : vector<2x32xf32>
    %123 = arith.mulf %112, %87 : vector<2x32xf32>
    %124 = arith.mulf %104, %114 : vector<2x32xf32>
    %125 = arith.addf %123, %124 : vector<2x32xf32>
    %126 = math.tanh %125 : vector<2x32xf32>
    %127 = arith.mulf %122, %126 : vector<2x32xf32>
    %128 = vector.shape_cast %127 : vector<2x32xf32> to vector<2x1x32xf32>
    %c0_48 = arith.constant 0 : index
    %c2 = arith.constant 2 : index
    %c0_49 = arith.constant 0 : index
    %129 = vector.load %arg6[%c0_48, %c2, %c0_49] : memref<2x8x32xf32, #tpu.memory_space<vmem>>, vector<2x1x32xf32>
    tpu.vector_store %arg6[%c0_48, %c2, %c0_49], %128 {strides = array<i32>} : memref<2x8x32xf32, #tpu.memory_space<vmem>>, vector<2x1x32xf32>,
    %130 = vector.extract_strided_slice %12 {offsets = [0, 3, 0], sizes = [2, 1, 128], strides = [1, 1, 1]} : vector<2x8x128xf32> to vector<2x1x128xf32>
    %131 = vector.shape_cast %130 : vector<2x1x128xf32> to vector<2x128xf32>
    %132 = arith.truncf %127 : vector<2x32xf32> to vector<2x32xbf16>
    %cst_50 = arith.constant dense<0.000000e+00> : vector<2x128xf32>
    %133 = tpu.matmul %132, %13, %cst_50 {dimension_numbers = #tpu.dot_dimension_numbers<[1], [0], [0], [1], [0, 0, 1, 1], [], []>} : vector<2x32xbf16>, vector<32x128xbf16>, vector<2x128xf32> -> vector<2x128xf32>
    %134 = arith.addf %131, %133 : vector<2x128xf32>
    %135 = vector.extract_strided_slice %134 {offsets = [0, 0], sizes = [2, 32], strides = [1, 1]} : vector<2x128xf32> to vector<2x32xf32>
    %cst_51 = arith.constant 5.000000e-01 : f32
    %136 = vector.broadcast %cst_51 : f32 to vector<2x32xf32>
    %137 = arith.mulf %136, %135 : vector<2x32xf32>
    %138 = math.tanh %137 : vector<2x32xf32>
    %cst_52 = arith.constant 5.000000e-01 : f32
    %139 = vector.broadcast %cst_52 : f32 to vector<2x32xf32>
    %140 = arith.mulf %139, %138 : vector<2x32xf32>
    %cst_53 = arith.constant 5.000000e-01 : f32
    %141 = vector.broadcast %cst_53 : f32 to vector<2x32xf32>
    %142 = arith.addf %140, %141 : vector<2x32xf32>
    %143 = vector.extract_strided_slice %134 {offsets = [0, 32], sizes = [2, 32], strides = [1, 1]} : vector<2x128xf32> to vector<2x32xf32>
    %cst_54 = arith.constant 5.000000e-01 : f32
    %144 = vector.broadcast %cst_54 : f32 to vector<2x32xf32>
    %145 = arith.mulf %144, %143 : vector<2x32xf32>
    %146 = math.tanh %145 : vector<2x32xf32>
    %cst_55 = arith.constant 5.000000e-01 : f32
    %147 = vector.broadcast %cst_55 : f32 to vector<2x32xf32>
    %148 = arith.mulf %147, %146 : vector<2x32xf32>
    %cst_56 = arith.constant 5.000000e-01 : f32
    %149 = vector.broadcast %cst_56 : f32 to vector<2x32xf32>
    %150 = arith.addf %148, %149 : vector<2x32xf32>
    %151 = vector.extract_strided_slice %134 {offsets = [0, 64], sizes = [2, 32], strides = [1, 1]} : vector<2x128xf32> to vector<2x32xf32>
    %152 = math.tanh %151 : vector<2x32xf32>
    %153 = vector.extract_strided_slice %134 {offsets = [0, 96], sizes = [2, 32], strides = [1, 1]} : vector<2x128xf32> to vector<2x32xf32>
    %cst_57 = arith.constant 5.000000e-01 : f32
    %154 = vector.broadcast %cst_57 : f32 to vector<2x32xf32>
    %155 = arith.mulf %154, %153 : vector<2x32xf32>
    %156 = math.tanh %155 : vector<2x32xf32>
    %cst_58 = arith.constant 5.000000e-01 : f32
    %157 = vector.broadcast %cst_58 : f32 to vector<2x32xf32>
    %158 = arith.mulf %157, %156 : vector<2x32xf32>
    %cst_59 = arith.constant 5.000000e-01 : f32
    %159 = vector.broadcast %cst_59 : f32 to vector<2x32xf32>
    %160 = arith.addf %158, %159 : vector<2x32xf32>
    %161 = arith.mulf %150, %125 : vector<2x32xf32>
    %162 = arith.mulf %142, %152 : vector<2x32xf32>
    %163 = arith.addf %161, %162 : vector<2x32xf32>
    %164 = math.tanh %163 : vector<2x32xf32>
    %165 = arith.mulf %160, %164 : vector<2x32xf32>
    %166 = vector.shape_cast %165 : vector<2x32xf32> to vector<2x1x32xf32>
    %c0_60 = arith.constant 0 : index
    %c3 = arith.constant 3 : index
    %c0_61 = arith.constant 0 : index
    %167 = vector.load %arg6[%c0_60, %c3, %c0_61] : memref<2x8x32xf32, #tpu.memory_space<vmem>>, vector<2x1x32xf32>
    tpu.vector_store %arg6[%c0_60, %c3, %c0_61], %166 {strides = array<i32>} : memref<2x8x32xf32, #tpu.memory_space<vmem>>, vector<2x1x32xf32>,
    %168 = vector.extract_strided_slice %12 {offsets = [0, 4, 0], sizes = [2, 1, 128], strides = [1, 1, 1]} : vector<2x8x128xf32> to vector<2x1x128xf32>
    %169 = vector.shape_cast %168 : vector<2x1x128xf32> to vector<2x128xf32>
    %170 = arith.truncf %165 : vector<2x32xf32> to vector<2x32xbf16>
    %cst_62 = arith.constant dense<0.000000e+00> : vector<2x128xf32>
    %171 = tpu.matmul %170, %13, %cst_62 {dimension_numbers = #tpu.dot_dimension_numbers<[1], [0], [0], [1], [0, 0, 1, 1], [], []>} : vector<2x32xbf16>, vector<32x128xbf16>, vector<2x128xf32> -> vector<2x128xf32>
    %172 = arith.addf %169, %171 : vector<2x128xf32>
    %173 = vector.extract_strided_slice %172 {offsets = [0, 0], sizes = [2, 32], strides = [1, 1]} : vector<2x128xf32> to vector<2x32xf32>
    %cst_63 = arith.constant 5.000000e-01 : f32
    %174 = vector.broadcast %cst_63 : f32 to vector<2x32xf32>
    %175 = arith.mulf %174, %173 : vector<2x32xf32>
    %176 = math.tanh %175 : vector<2x32xf32>
    %cst_64 = arith.constant 5.000000e-01 : f32
    %177 = vector.broadcast %cst_64 : f32 to vector<2x32xf32>
    %178 = arith.mulf %177, %176 : vector<2x32xf32>
    %cst_65 = arith.constant 5.000000e-01 : f32
    %179 = vector.broadcast %cst_65 : f32 to vector<2x32xf32>
    %180 = arith.addf %178, %179 : vector<2x32xf32>
    %181 = vector.extract_strided_slice %172 {offsets = [0, 32], sizes = [2, 32], strides = [1, 1]} : vector<2x128xf32> to vector<2x32xf32>
    %cst_66 = arith.constant 5.000000e-01 : f32
    %182 = vector.broadcast %cst_66 : f32 to vector<2x32xf32>
    %183 = arith.mulf %182, %181 : vector<2x32xf32>
    %184 = math.tanh %183 : vector<2x32xf32>
    %cst_67 = arith.constant 5.000000e-01 : f32
    %185 = vector.broadcast %cst_67 : f32 to vector<2x32xf32>
    %186 = arith.mulf %185, %184 : vector<2x32xf32>
    %cst_68 = arith.constant 5.000000e-01 : f32
    %187 = vector.broadcast %cst_68 : f32 to vector<2x32xf32>
    %188 = arith.addf %186, %187 : vector<2x32xf32>
    %189 = vector.extract_strided_slice %172 {offsets = [0, 64], sizes = [2, 32], strides = [1, 1]} : vector<2x128xf32> to vector<2x32xf32>
    %190 = math.tanh %189 : vector<2x32xf32>
    %191 = vector.extract_strided_slice %172 {offsets = [0, 96], sizes = [2, 32], strides = [1, 1]} : vector<2x128xf32> to vector<2x32xf32>
    %cst_69 = arith.constant 5.000000e-01 : f32
    %192 = vector.broadcast %cst_69 : f32 to vector<2x32xf32>
    %193 = arith.mulf %192, %191 : vector<2x32xf32>
    %194 = math.tanh %193 : vector<2x32xf32>
    %cst_70 = arith.constant 5.000000e-01 : f32
    %195 = vector.broadcast %cst_70 : f32 to vector<2x32xf32>
    %196 = arith.mulf %195, %194 : vector<2x32xf32>
    %cst_71 = arith.constant 5.000000e-01 : f32
    %197 = vector.broadcast %cst_71 : f32 to vector<2x32xf32>
    %198 = arith.addf %196, %197 : vector<2x32xf32>
    %199 = arith.mulf %188, %163 : vector<2x32xf32>
    %200 = arith.mulf %180, %190 : vector<2x32xf32>
    %201 = arith.addf %199, %200 : vector<2x32xf32>
    %202 = math.tanh %201 : vector<2x32xf32>
    %203 = arith.mulf %198, %202 : vector<2x32xf32>
    %204 = vector.shape_cast %203 : vector<2x32xf32> to vector<2x1x32xf32>
    %c0_72 = arith.constant 0 : index
    %c4 = arith.constant 4 : index
    %c0_73 = arith.constant 0 : index
    %205 = vector.load %arg6[%c0_72, %c4, %c0_73] : memref<2x8x32xf32, #tpu.memory_space<vmem>>, vector<2x1x32xf32>
    tpu.vector_store %arg6[%c0_72, %c4, %c0_73], %204 {strides = array<i32>} : memref<2x8x32xf32, #tpu.memory_space<vmem>>, vector<2x1x32xf32>,
    %206 = vector.extract_strided_slice %12 {offsets = [0, 5, 0], sizes = [2, 1, 128], strides = [1, 1, 1]} : vector<2x8x128xf32> to vector<2x1x128xf32>
    %207 = vector.shape_cast %206 : vector<2x1x128xf32> to vector<2x128xf32>
    %208 = arith.truncf %203 : vector<2x32xf32> to vector<2x32xbf16>
    %cst_74 = arith.constant dense<0.000000e+00> : vector<2x128xf32>
    %209 = tpu.matmul %208, %13, %cst_74 {dimension_numbers = #tpu.dot_dimension_numbers<[1], [0], [0], [1], [0, 0, 1, 1], [], []>} : vector<2x32xbf16>, vector<32x128xbf16>, vector<2x128xf32> -> vector<2x128xf32>
    %210 = arith.addf %207, %209 : vector<2x128xf32>
    %211 = vector.extract_strided_slice %210 {offsets = [0, 0], sizes = [2, 32], strides = [1, 1]} : vector<2x128xf32> to vector<2x32xf32>
    %cst_75 = arith.constant 5.000000e-01 : f32
    %212 = vector.broadcast %cst_75 : f32 to vector<2x32xf32>
    %213 = arith.mulf %212, %211 : vector<2x32xf32>
    %214 = math.tanh %213 : vector<2x32xf32>
    %cst_76 = arith.constant 5.000000e-01 : f32
    %215 = vector.broadcast %cst_76 : f32 to vector<2x32xf32>
    %216 = arith.mulf %215, %214 : vector<2x32xf32>
    %cst_77 = arith.constant 5.000000e-01 : f32
    %217 = vector.broadcast %cst_77 : f32 to vector<2x32xf32>
    %218 = arith.addf %216, %217 : vector<2x32xf32>
    %219 = vector.extract_strided_slice %210 {offsets = [0, 32], sizes = [2, 32], strides = [1, 1]} : vector<2x128xf32> to vector<2x32xf32>
    %cst_78 = arith.constant 5.000000e-01 : f32
    %220 = vector.broadcast %cst_78 : f32 to vector<2x32xf32>
    %221 = arith.mulf %220, %219 : vector<2x32xf32>
    %222 = math.tanh %221 : vector<2x32xf32>
    %cst_79 = arith.constant 5.000000e-01 : f32
    %223 = vector.broadcast %cst_79 : f32 to vector<2x32xf32>
    %224 = arith.mulf %223, %222 : vector<2x32xf32>
    %cst_80 = arith.constant 5.000000e-01 : f32
    %225 = vector.broadcast %cst_80 : f32 to vector<2x32xf32>
    %226 = arith.addf %224, %225 : vector<2x32xf32>
    %227 = vector.extract_strided_slice %210 {offsets = [0, 64], sizes = [2, 32], strides = [1, 1]} : vector<2x128xf32> to vector<2x32xf32>
    %228 = math.tanh %227 : vector<2x32xf32>
    %229 = vector.extract_strided_slice %210 {offsets = [0, 96], sizes = [2, 32], strides = [1, 1]} : vector<2x128xf32> to vector<2x32xf32>
    %cst_81 = arith.constant 5.000000e-01 : f32
    %230 = vector.broadcast %cst_81 : f32 to vector<2x32xf32>
    %231 = arith.mulf %230, %229 : vector<2x32xf32>
    %232 = math.tanh %231 : vector<2x32xf32>
    %cst_82 = arith.constant 5.000000e-01 : f32
    %233 = vector.broadcast %cst_82 : f32 to vector<2x32xf32>
    %234 = arith.mulf %233, %232 : vector<2x32xf32>
    %cst_83 = arith.constant 5.000000e-01 : f32
    %235 = vector.broadcast %cst_83 : f32 to vector<2x32xf32>
    %236 = arith.addf %234, %235 : vector<2x32xf32>
    %237 = arith.mulf %226, %201 : vector<2x32xf32>
    %238 = arith.mulf %218, %228 : vector<2x32xf32>
    %239 = arith.addf %237, %238 : vector<2x32xf32>
    %240 = math.tanh %239 : vector<2x32xf32>
    %241 = arith.mulf %236, %240 : vector<2x32xf32>
    %242 = vector.shape_cast %241 : vector<2x32xf32> to vector<2x1x32xf32>
    %c0_84 = arith.constant 0 : index
    %c5 = arith.constant 5 : index
    %c0_85 = arith.constant 0 : index
    %243 = vector.load %arg6[%c0_84, %c5, %c0_85] : memref<2x8x32xf32, #tpu.memory_space<vmem>>, vector<2x1x32xf32>
    tpu.vector_store %arg6[%c0_84, %c5, %c0_85], %242 {strides = array<i32>} : memref<2x8x32xf32, #tpu.memory_space<vmem>>, vector<2x1x32xf32>,
    %244 = vector.extract_strided_slice %12 {offsets = [0, 6, 0], sizes = [2, 1, 128], strides = [1, 1, 1]} : vector<2x8x128xf32> to vector<2x1x128xf32>
    %245 = vector.shape_cast %244 : vector<2x1x128xf32> to vector<2x128xf32>
    %246 = arith.truncf %241 : vector<2x32xf32> to vector<2x32xbf16>
    %cst_86 = arith.constant dense<0.000000e+00> : vector<2x128xf32>
    %247 = tpu.matmul %246, %13, %cst_86 {dimension_numbers = #tpu.dot_dimension_numbers<[1], [0], [0], [1], [0, 0, 1, 1], [], []>} : vector<2x32xbf16>, vector<32x128xbf16>, vector<2x128xf32> -> vector<2x128xf32>
    %248 = arith.addf %245, %247 : vector<2x128xf32>
    %249 = vector.extract_strided_slice %248 {offsets = [0, 0], sizes = [2, 32], strides = [1, 1]} : vector<2x128xf32> to vector<2x32xf32>
    %cst_87 = arith.constant 5.000000e-01 : f32
    %250 = vector.broadcast %cst_87 : f32 to vector<2x32xf32>
    %251 = arith.mulf %250, %249 : vector<2x32xf32>
    %252 = math.tanh %251 : vector<2x32xf32>
    %cst_88 = arith.constant 5.000000e-01 : f32
    %253 = vector.broadcast %cst_88 : f32 to vector<2x32xf32>
    %254 = arith.mulf %253, %252 : vector<2x32xf32>
    %cst_89 = arith.constant 5.000000e-01 : f32
    %255 = vector.broadcast %cst_89 : f32 to vector<2x32xf32>
    %256 = arith.addf %254, %255 : vector<2x32xf32>
    %257 = vector.extract_strided_slice %248 {offsets = [0, 32], sizes = [2, 32], strides = [1, 1]} : vector<2x128xf32> to vector<2x32xf32>
    %cst_90 = arith.constant 5.000000e-01 : f32
    %258 = vector.broadcast %cst_90 : f32 to vector<2x32xf32>
    %259 = arith.mulf %258, %257 : vector<2x32xf32>
    %260 = math.tanh %259 : vector<2x32xf32>
    %cst_91 = arith.constant 5.000000e-01 : f32
    %261 = vector.broadcast %cst_91 : f32 to vector<2x32xf32>
    %262 = arith.mulf %261, %260 : vector<2x32xf32>
    %cst_92 = arith.constant 5.000000e-01 : f32
    %263 = vector.broadcast %cst_92 : f32 to vector<2x32xf32>
    %264 = arith.addf %262, %263 : vector<2x32xf32>
    %265 = vector.extract_strided_slice %248 {offsets = [0, 64], sizes = [2, 32], strides = [1, 1]} : vector<2x128xf32> to vector<2x32xf32>
    %266 = math.tanh %265 : vector<2x32xf32>
    %267 = vector.extract_strided_slice %248 {offsets = [0, 96], sizes = [2, 32], strides = [1, 1]} : vector<2x128xf32> to vector<2x32xf32>
    %cst_93 = arith.constant 5.000000e-01 : f32
    %268 = vector.broadcast %cst_93 : f32 to vector<2x32xf32>
    %269 = arith.mulf %268, %267 : vector<2x32xf32>
    %270 = math.tanh %269 : vector<2x32xf32>
    %cst_94 = arith.constant 5.000000e-01 : f32
    %271 = vector.broadcast %cst_94 : f32 to vector<2x32xf32>
    %272 = arith.mulf %271, %270 : vector<2x32xf32>
    %cst_95 = arith.constant 5.000000e-01 : f32
    %273 = vector.broadcast %cst_95 : f32 to vector<2x32xf32>
    %274 = arith.addf %272, %273 : vector<2x32xf32>
    %275 = arith.mulf %264, %239 : vector<2x32xf32>
    %276 = arith.mulf %256, %266 : vector<2x32xf32>
    %277 = arith.addf %275, %276 : vector<2x32xf32>
    %278 = math.tanh %277 : vector<2x32xf32>
    %279 = arith.mulf %274, %278 : vector<2x32xf32>
    %280 = vector.shape_cast %279 : vector<2x32xf32> to vector<2x1x32xf32>
    %c0_96 = arith.constant 0 : index
    %c6 = arith.constant 6 : index
    %c0_97 = arith.constant 0 : index
    %281 = vector.load %arg6[%c0_96, %c6, %c0_97] : memref<2x8x32xf32, #tpu.memory_space<vmem>>, vector<2x1x32xf32>
    tpu.vector_store %arg6[%c0_96, %c6, %c0_97], %280 {strides = array<i32>} : memref<2x8x32xf32, #tpu.memory_space<vmem>>, vector<2x1x32xf32>,
    %282 = vector.extract_strided_slice %12 {offsets = [0, 7, 0], sizes = [2, 1, 128], strides = [1, 1, 1]} : vector<2x8x128xf32> to vector<2x1x128xf32>
    %283 = vector.shape_cast %282 : vector<2x1x128xf32> to vector<2x128xf32>
    %284 = arith.truncf %279 : vector<2x32xf32> to vector<2x32xbf16>
    %cst_98 = arith.constant dense<0.000000e+00> : vector<2x128xf32>
    %285 = tpu.matmul %284, %13, %cst_98 {dimension_numbers = #tpu.dot_dimension_numbers<[1], [0], [0], [1], [0, 0, 1, 1], [], []>} : vector<2x32xbf16>, vector<32x128xbf16>, vector<2x128xf32> -> vector<2x128xf32>
    %286 = arith.addf %283, %285 : vector<2x128xf32>
    %287 = vector.extract_strided_slice %286 {offsets = [0, 0], sizes = [2, 32], strides = [1, 1]} : vector<2x128xf32> to vector<2x32xf32>
    %cst_99 = arith.constant 5.000000e-01 : f32
    %288 = vector.broadcast %cst_99 : f32 to vector<2x32xf32>
    %289 = arith.mulf %288, %287 : vector<2x32xf32>
    %290 = math.tanh %289 : vector<2x32xf32>
    %cst_100 = arith.constant 5.000000e-01 : f32
    %291 = vector.broadcast %cst_100 : f32 to vector<2x32xf32>
    %292 = arith.mulf %291, %290 : vector<2x32xf32>
    %cst_101 = arith.constant 5.000000e-01 : f32
    %293 = vector.broadcast %cst_101 : f32 to vector<2x32xf32>
    %294 = arith.addf %292, %293 : vector<2x32xf32>
    %295 = vector.extract_strided_slice %286 {offsets = [0, 32], sizes = [2, 32], strides = [1, 1]} : vector<2x128xf32> to vector<2x32xf32>
    %cst_102 = arith.constant 5.000000e-01 : f32
    %296 = vector.broadcast %cst_102 : f32 to vector<2x32xf32>
    %297 = arith.mulf %296, %295 : vector<2x32xf32>
    %298 = math.tanh %297 : vector<2x32xf32>
    %cst_103 = arith.constant 5.000000e-01 : f32
    %299 = vector.broadcast %cst_103 : f32 to vector<2x32xf32>
    %300 = arith.mulf %299, %298 : vector<2x32xf32>
    %cst_104 = arith.constant 5.000000e-01 : f32
    %301 = vector.broadcast %cst_104 : f32 to vector<2x32xf32>
    %302 = arith.addf %300, %301 : vector<2x32xf32>
    %303 = vector.extract_strided_slice %286 {offsets = [0, 64], sizes = [2, 32], strides = [1, 1]} : vector<2x128xf32> to vector<2x32xf32>
    %304 = math.tanh %303 : vector<2x32xf32>
    %305 = vector.extract_strided_slice %286 {offsets = [0, 96], sizes = [2, 32], strides = [1, 1]} : vector<2x128xf32> to vector<2x32xf32>
    %cst_105 = arith.constant 5.000000e-01 : f32
    %306 = vector.broadcast %cst_105 : f32 to vector<2x32xf32>
    %307 = arith.mulf %306, %305 : vector<2x32xf32>
    %308 = math.tanh %307 : vector<2x32xf32>
    %cst_106 = arith.constant 5.000000e-01 : f32
    %309 = vector.broadcast %cst_106 : f32 to vector<2x32xf32>
    %310 = arith.mulf %309, %308 : vector<2x32xf32>
    %cst_107 = arith.constant 5.000000e-01 : f32
    %311 = vector.broadcast %cst_107 : f32 to vector<2x32xf32>
    %312 = arith.addf %310, %311 : vector<2x32xf32>
    %313 = arith.mulf %302, %277 : vector<2x32xf32>
    %314 = arith.mulf %294, %304 : vector<2x32xf32>
    %315 = arith.addf %313, %314 : vector<2x32xf32>
    %316 = math.tanh %315 : vector<2x32xf32>
    %317 = arith.mulf %312, %316 : vector<2x32xf32>
    %318 = vector.shape_cast %317 : vector<2x32xf32> to vector<2x1x32xf32>
    %c0_108 = arith.constant 0 : index
    %c7 = arith.constant 7 : index
    %c0_109 = arith.constant 0 : index
    %319 = vector.load %arg6[%c0_108, %c7, %c0_109] : memref<2x8x32xf32, #tpu.memory_space<vmem>>, vector<2x1x32xf32>
    tpu.vector_store %arg6[%c0_108, %c7, %c0_109], %318 {strides = array<i32>} : memref<2x8x32xf32, #tpu.memory_space<vmem>>, vector<2x1x32xf32>,
    %c0_110 = arith.constant 0 : index
    %c0_111 = arith.constant 0 : index
    %320 = vector.load %arg7[%c0_110, %c0_111] : memref<2x32xf32, #tpu.memory_space<vmem>>, vector<2x32xf32>
    tpu.vector_store %arg7[%c0_110, %c0_111], %317 {strides = array<i32>} : memref<2x32xf32, #tpu.memory_space<vmem>>, vector<2x32xf32>,
    %c0_112 = arith.constant 0 : index
    %c0_113 = arith.constant 0 : index
    %321 = vector.load %arg8[%c0_112, %c0_113] : memref<2x32xf32, #tpu.memory_space<vmem>>, vector<2x32xf32>
    tpu.vector_store %arg8[%c0_112, %c0_113], %315 {strides = array<i32>} : memref<2x32xf32, #tpu.memory_space<vmem>>, vector<2x32xf32>,
    return
  }
  func.func @transform_0(%arg0: i32, %arg1: i32) -> (i32, i32, i32) {
    %c0_i32 = arith.constant 0 : i32
    %c0_i32_0 = arith.constant 0 : i32
    return %arg0, %arg1, %c0_i32 : i32, i32, i32
  }
  func.func @transform_1(%arg0: i32, %arg1: i32) -> (i32, i32) {
    %c0_i32 = arith.constant 0 : i32
    %c0_i32_0 = arith.constant 0 : i32
    %c0_i32_1 = arith.constant 0 : i32
    return %c0_i32, %c0_i32_0 : i32, i32
  }
  func.func @transform_2(%arg0: i32, %arg1: i32) -> (i32, i32) {
    %c0_i32 = arith.constant 0 : i32
    %c0_i32_0 = arith.constant 0 : i32
    %c0_i32_1 = arith.constant 0 : i32
    return %c0_i32, %c0_i32_0 : i32, i32
  }
  func.func @transform_3(%arg0: i32, %arg1: i32) -> (i32, i32) {
    %c0_i32 = arith.constant 0 : i32
    %c0_i32_0 = arith.constant 0 : i32
    %c0_i32_1 = arith.constant 0 : i32
    return %c0_i32, %c0_i32_0 : i32, i32
  }
  func.func @transform_4(%arg0: i32, %arg1: i32) -> (i32, i32, i32) {
    %c0_i32 = arith.constant 0 : i32
    %c0_i32_0 = arith.constant 0 : i32
    return %arg0, %arg1, %c0_i32 : i32, i32, i32
  }
}

</mosaic_0001>

<bundles_post_ra>
// kernel: tpu_custom_call.1
= control target key start
LH: loop header
LB: loop body
LE: loop exit
PB: predicated region body
PF: predicated region fallthrough
CT: control target
= control target key end

     0   :  { %9 = vsyncpa [#allocation5], 0  ;;  %s1782_s0 = inlined_call_operand.hbm [shape: f32[2,8,16], index: 0, kind: input, shape index: {}]   ;;  %s1783_s1 = inlined_call_operand.hbm [shape: bf16[16,128], index: 1, kind: input, shape index: {}]   ;;  %s1784_s2 = inlined_call_operand.hbm [shape: bf16[32,128], index: 2, kind: input, shape index: {}]   ;;  %s1785_s3 = inlined_call_operand.vmem [shape: f32[1,128], index: 3, kind: input, shape index: {}]   ;;  %s1786_s4 = inlined_call_operand.hbm [shape: f32[2,8,32], index: 4, kind: output, shape index: {}]  }
   0x1   :  { %10 = vsyncpa [#allocation8], 0 }
   0x2   :  { %11 = vsyncpa [#allocation6], 0  ;;  %s1472_s15 = smov [#allocation7]  }
   0x3   :  { %s29_s16 = sshll.u32 %s1472_s15, 4  ;;  %s30_s16 = int_to_ptr.vmem [resolvable:$true] %s29_s16 }
   0x4   :  { %s1394_s17 = scalar_lea.vmem %s30_s16, 128  ;;  %p1399_p1 = scmp.lt.s32.totalorder %s30_s16, %s30_s16 }
   0x5   :  { %p1395_p0 = scmp.ne.s32.totalorder %s30_s16, %s1394_s17  ;;  %p1400_p2 = scmp.lt.s32.totalorder %s1394_s17, %s1394_s17 }
   0x7   :  { %p1401_p3 = por %p1400_p2, %p1399_p1 }
   0x9   :  { %p1402_p4 = pnand %p1401_p3, %p1395_p0 }
   0xb   :  { %1405 = shalt.err (!%p1402_p4)
}
   0xc   :  { %s1473_s18 = smov 64   ;;  %s1474_s19 = smov 4  }
   0xd   :  { %35 = dma.hbm_to_vmem [thread:$0]  %s1783_s1, 128, %s30_s16, [#allocation8], %s1473_s18, %s1473_s18, %s1474_s19  }
   0xe   :  { %s1475_s22 = smov [#allocation4]  }
   0xf   :  { %s17_s23 = sshll.u32 %s1475_s22, 4  ;;  %s18_s23 = int_to_ptr.vmem [resolvable:$true] %s17_s23 }
  0x10   :  { %s1414_s24 = scalar_lea.vmem %s18_s23, 256  ;;  %p1419_p6 = scmp.lt.s32.totalorder %s18_s23, %s18_s23 }
  0x11   :  { %p1415_p5 = scmp.ne.s32.totalorder %s18_s23, %s1414_s24  ;;  %p1420_p7 = scmp.lt.s32.totalorder %s1414_s24, %s1414_s24 }
  0x13   :  { %p1421_p8 = por %p1420_p7, %p1419_p6 }
  0x15   :  { %p1422_p9 = pnand %p1421_p8, %p1415_p5 }
  0x17   :  { %1425 = shalt.err (!%p1422_p9)
}
  0x18   :  { %s1476_s25 = smov 128   ;;  %s1477_s26 = smov 8  }
  0x19   :  { %23 = dma.hbm_to_vmem [thread:$0]  %s1782_s0, 256, %s18_s23, [#allocation5], %s1476_s25, %s1476_s25, %s1477_s26  }
  0x1a   :  { %s1478_s1 = smov [#allocation9]  }
  0x1b   :  { %s41_s29 = sshll.u32 %s1478_s1, 4  ;;  %s42_s29 = int_to_ptr.vmem [resolvable:$true] %s41_s29 }
  0x1c   :  { %s1434_s30 = scalar_lea.vmem %s42_s29, 256  ;;  %p1439_p11 = scmp.lt.s32.totalorder %s42_s29, %s42_s29 }
  0x1d   :  { %p1435_p10 = scmp.ne.s32.totalorder %s42_s29, %s1434_s30  ;;  %p1440_p12 = scmp.lt.s32.totalorder %s1434_s30, %s1434_s30 }
  0x1f   :  { %p1441_p13 = por %p1440_p12, %p1439_p11 }
  0x21   :  { %p1442_p0 = pnand %p1441_p13, %p1435_p10 }
  0x23   :  { %1445 = shalt.err (!%p1442_p0)
}
  0x24   :  { %47 = dma.hbm_to_vmem [thread:$0]  %s1784_s2, 256, %s42_s29, [#allocation8], %s1473_s18, %s1473_s18, %s1474_s19  }
  0x25   :  { %1466 = dma.done.wait [#allocation5], 256  }
  0x26   :  { %1467 = vsyncadd [#allocation5], 4294967040 }
  0x27   :  { %1468 = dma.done.wait [#allocation8], 384  }
  0x28   :  { %1469 = vsyncadd [#allocation8], 4294966912  ;;  %vm64_vm0 = vcmask 254976   ;;  %v1479_v0 = vmov 0.0   ;;  %vm1480_vm1 = vmmov 0   ;;  %v1287_v1 = vld [vmem:[#allocation7] sm:$0xff]  }
  0x29   :  { %1205 = vmatprep.subr.bf16.mxu0 %v1479_v0  ;;  %1211 = vmatprep.subr.bf16.mxu1 %v1479_v0  ;;  %65 = vst.msk [vmem:[#allocation2] sm:$0x3] %vm64_vm0, %v1479_v0  ;;  %66 = vst.msk [vmem:[#allocation3] sm:$0x3] %vm64_vm0, %v1479_v0  ;;  %v1533_v2 = vld [vmem:[#allocation9 + $0x8] sm:$0xff]   ;;  %v68_v4 = vld [vmem:[#allocation4 + $0x8] sm:$0xff] }
  0x2a   :  { %1207 = vmatprep.mubr.msk.bf16.mxu0 %vm1480_vm1, %v1479_v0  ;;  %1215 = vmatprep.mubr.msk.bf16.mxu1 %vm1480_vm1, %v1479_v0  ;;  %v67_v3 = vld [vmem:[#allocation4] sm:$0xff]  ;;  %vm84_vm2 = vcmask 130048   ;;  %v1536_v6 = vld [vmem:[#allocation9] sm:$0xff]   ;;  %vm157_vm3 = vcmask 261120   ;;  %s1481_s0 = smov 32   ;;  %vm277_vm4 = vcmask 1041409  }
  0x2b   :  { %1206 = vmatpush3.bf16.msra.mxu0 %v1287_v1  ;;  %1212 = vmatpush3.bf16.msra.mxu1 %v1533_v2  ;;  %v1178_v5 = vpack.c.bf16 %v68_v4, %v67_v3  ;;  %v1167_v13 = vld [vmem:[%s1785_s3] ss:$0 sm:$0xff]  ;;  %vm267_vm5 = vcmask 253952   ;;  %vm389_vm6 = vcmask 254977   ;;  %s1482_s3 = smov 96   ;;  %vm511_vm7 = vcmask 256002  }
  0x2c   :  { %1219 = vmatprep.subr.bf16.mxu0 %v1479_v0  ;;  %1213 = vmatprep.subr.bf16.mxu1 %v1479_v0  ;;  %vm634_vm8 = vcmask 257027   ;;  %vm757_vm9 = vcmask 258052   ;;  %vm880_vm10 = vcmask 259077   ;;  %vm1003_vm11 = vcmask 260102   ;;  %s1483_s8 = smov [#allocation10]  }
  0x2d   :  { %s1151_s9 = sshll.u32 %s1483_s8, 4  ;;  %vm1126_vm12 = vcmask 261127   ;;  %s1152_s9 = int_to_ptr.vmem [resolvable:$true] %s1151_s9 }
  0x2e   :  { %1208 = vmatmul.mubr.msk.bf16.vlgmr.msra.gmra.mxu0 %vm84_vm2, %v1178_v5  ;;  %s1446_s10 = scalar_lea.vmem %s1152_s9, 256  ;;  %p1451_p2 = scmp.lt.s32.totalorder %s1152_s9, %s1152_s9 }
  0x2f   :  { %1220 = vmatpush3.bf16.msra.mxu0 %v1533_v2  ;;  %1223 = vmatprep.mubr.msk.bf16.mxu0 %vm1480_vm1, %v1479_v0  ;;  %p1447_p1 = scmp.ne.s32.totalorder %s1152_s9, %s1446_s10  ;;  %p1452_p3 = scmp.lt.s32.totalorder %s1446_s10, %s1446_s10 }
  0x30   :  { %v142_v7 = vld [vmem:[#allocation2] sm:$0x3]  ;;  %v143_v8 = vld [vmem:[#allocation3] sm:$0x3]  ;;  %1214 = vmatpush3.bf16.msra.mxu1 %v1536_v6  ;;  %1221 = vmatprep.subr.bf16.mxu0 %v1479_v0 }
  0x31   :  { %v218_v9 = vrot.slane %v143_v8, 1  ;;  %v144_v10 = vpack.c.bf16 %v142_v7, %v142_v7  ;;  %1227 = vmatprep.subr.bf16.mxu1 %v1479_v0  ;;  %p1453_p4 = por %p1452_p3, %p1451_p2 }
  0x33   :  { %221 = vrot.lane.b32.xlu1 %v218_v9, %s1481_s0  ;;  %1216 = vmatmul.mubr.msk.bf16.vlgmr.msra.gmra.mxu1 %vm157_vm3, %v144_v10  ;;  %p1454_p5 = pnand %p1453_p4, %p1447_p1 }
  0x34   :  { %1222 = vmatpush3.bf16.msra.mxu0 %v1536_v6  ;;  %1228 = vmatpush3.bf16.msra.mxu1 %v1533_v2 }
  0x35   :  { %1229 = vmatprep.subr.bf16.mxu1 %v1479_v0  ;;  %1231 = vmatprep.mubr.msk.bf16.mxu1 %vm1480_vm1, %v1479_v0 }
  0x36   :  { %1235 = vmatprep.subr.bf16.mxu0 %v1479_v0 }
  0x37   :  { %219 = vrot.lane.b32.xlu1 %v143_v8, %s1481_s0 }
  0x38   :  { %1230 = vmatpush3.bf16.msra.mxu1 %v1536_v6 }
  0x39   :  { %1243 = vmatprep.subr.bf16.mxu1 %v1479_v0 }
  0xa5   :  { %v222_v39 = vpop.permute.xlu1 %221 }
  0xa9   :  { %v220_v41 = vpop.permute.xlu1 %219 }
  0xee   :  { %v122_v11 = vpop.f32.mrf.mxu0 }
  0xef   :  { %v1563_v21 = vadd.f32 %v1167_v13, %v122_v11 }
  0xf0   :  { %v1209_v12 = vpop.f32.mrf.mxu0 }
  0xf2   :  { %v125_v14 = vpop.f32.mrf.mxu0 }
  0xf3   :  { %v1560_v15 = vadd.f32 %v1167_v13, %v125_v14  ;;  %v195_v16 = vpop.f32.mrf.mxu1 }
  0xf4   :  { %v202_v17 = vrot.slane %v195_v16, 1  ;;  %v1210_v18 = vpop.f32.mrf.mxu0  ;;  %v205_v23 = vadd.f32 %v195_v16, %v1563_v21 }
  0xf5   :  { %v1217_v19 = vpop.f32.mrf.mxu1 }
  0xf6   :  { %v206_v20 = vadd.f32 %v202_v17, %v1560_v15  ;;  %v207_v28 = vmul.f32 0.5, %v205_v23 }
  0xf7   :  { %v198_v22 = vpop.f32.mrf.mxu1 }
  0xf8   :  { %1290 = vtanh.f32 %v206_v20  ;;  %v208_v27 = vmul.f32 0.5, %v206_v20 }
  0xf9   :  { %v1218_v24 = vpop.f32.mrf.mxu1  ;;  %1292 = vtanh.f32 %v205_v23 }
  0xfa   :  { %1294 = vtanh.f32 %v208_v27 }
  0xfb   :  { %1296 = vtanh.f32 %v207_v28 }
 0x105   :  { %v1291_v25 = vpop.eup %1290 }
 0x106   :  { %231 = vrot.lane.b32.xlu0 %v1291_v25, %s1473_s18  ;;  %v1293_v26 = vpop.eup %1292 }
 0x107   :  { %v1295_v29 = vpop.eup %1294 }
 0x108   :  { %v212_v30 = vmul.f32 0.5, %v1295_v29  ;;  %v1297_v31 = vpop.eup %1296 }
 0x109   :  { %v211_v33 = vmul.f32 0.5, %v1297_v31 }
 0x10a   :  { %229 = vrot.lane.b32.xlu0 %v1293_v26, %s1473_s18  ;;  %v214_v32 = vadd.f32 0.5, %v212_v30 }
 0x10b   :  { %v213_v36 = vadd.f32 0.5, %v211_v33 }
 0x10c   :  { %v226_v40 = vmul.f32 %v222_v39, %v214_v32 }
 0x10d   :  { %v225_v44 = vmul.f32 %v220_v41, %v213_v36 }
 0x178   :  { %v232_v34 = vpop.permute.xlu0 %231 }
 0x179   :  { %v236_v35 = vmul.f32 %v232_v34, %v214_v32 }
 0x17b   :  { %241 = vrot.lane.b32.xlu0 %v236_v35, %s1481_s0 }
 0x17c   :  { %v230_v37 = vpop.permute.xlu0 %229 }
 0x17d   :  { %v235_v38 = vmul.f32 %v230_v37, %v213_v36 }
 0x17f   :  { %239 = vrot.lane.b32.xlu1 %v235_v38, %s1481_s0 }
 0x1ed   :  { %v242_v42 = vpop.permute.xlu0 %241 }
 0x1ee   :  { %v246_v43 = vadd.f32 %v242_v42, %v226_v40 }
 0x1f0   :  { %1298 = vtanh.f32 %v246_v43  ;;  %v344_v23 = vrot.slane %v246_v43, 7 }
 0x1f1   :  { %v240_v45 = vpop.permute.xlu1 %239 }
 0x1f2   :  { %v245_v46 = vadd.f32 %v240_v45, %v225_v44 }
 0x1f4   :  { %1300 = vtanh.f32 %v245_v46  ;;  %v343_v25 = vrot.slane %v245_v46, 7 }
 0x1fd   :  { %v1299_v47 = vpop.eup %1298 }
 0x1fe   :  { %253 = vrot.lane.b32.xlu0 %v1299_v47, %s1473_s18 }
 0x201   :  { %v1301_v48 = vpop.eup %1300 }
 0x202   :  { %251 = vrot.lane.b32.xlu1 %v1301_v48, %s1473_s18 }
 0x270   :  { %v254_v49 = vpop.permute.xlu0 %253 }
 0x271   :  { %v1572_v50 = vmul.f32 %v254_v49, %v214_v32 }
 0x273   :  { %v271_v51 = vpack.c.bf16 %v1572_v50, %v1572_v50 }
 0x274   :  { %v252_v52 = vpop.permute.xlu1 %251 }
 0x275   :  { %v275_v53 = vunpack.c.l.b16 %v271_v51  ;;  %v1576_v54 = vmul.f32 %v252_v52, %v213_v36 }
 0x277   :  { %v270_v55 = vpack.c.bf16 %v1576_v54, %v1576_v54  ;;  %v276_v56 = vrot.slane %v275_v53, 7 }
 0x279   :  { %v274_v57 = vunpack.c.l.b16 %v270_v55 }
 0x27b   :  { %v278_v58 = vsel %vm277_vm4, %v276_v56, %v274_v57 }
 0x27c   :  { %v279_v59 = vpack.c.b16 %v278_v58, %v278_v58 }
 0x27e   :  { %280 = vrot.lane.b32.xlu0 %v279_v59, %s1481_s0 }
 0x2f0   :  { %v281_v60 = vpop.permute.xlu0 %280 }
 0x2f1   :  { %1224 = vmatmul.mubr.msk.bf16.vlgmr.msra.gmra.mxu0 %vm157_vm3, %v281_v60 }
 0x2f2   :  { %1236 = vmatpush3.bf16.msra.mxu0 %v1533_v2  ;;  %1239 = vmatprep.mubr.msk.bf16.mxu0 %vm1480_vm1, %v1479_v0 }
 0x2f3   :  { %1237 = vmatprep.subr.bf16.mxu0 %v1479_v0 }
 0x2f6   :  { %1238 = vmatpush3.bf16.msra.mxu0 %v1536_v6 }
 0x2f7   :  { %1251 = vmatprep.subr.bf16.mxu0 %v1479_v0 }
 0x3b1   :  { %v319_v61 = vpop.f32.mrf.mxu0 }
 0x3b2   :  { %v326_v62 = vrot.slane %v319_v61, 7  ;;  %v330_v63 = vadd.f32 %v319_v61, %v1560_v15 }
 0x3b3   :  { %v1225_v1 = vpop.f32.mrf.mxu0 }
 0x3b4   :  { %v329_v3 = vadd.f32 %v326_v62, %v1563_v21  ;;  %1302 = vtanh.f32 %v330_v63  ;;  %v332_v9 = vmul.f32 0.5, %v330_v63 }
 0x3b5   :  { %v322_v4 = vpop.f32.mrf.mxu0 }
 0x3b6   :  { %1304 = vtanh.f32 %v329_v3  ;;  %v331_v10 = vmul.f32 0.5, %v329_v3 }
 0x3b7   :  { %v1226_v5 = vpop.f32.mrf.mxu0  ;;  %1306 = vtanh.f32 %v332_v9 }
 0x3b8   :  { %1308 = vtanh.f32 %v331_v10 }
 0x3c1   :  { %v1303_v7 = vpop.eup %1302 }
 0x3c2   :  { %353 = vrot.lane.b32.xlu0 %v1303_v7, %s1473_s18 }
 0x3c3   :  { %v1305_v8 = vpop.eup %1304 }
 0x3c4   :  { %351 = vrot.lane.b32.xlu1 %v1305_v8, %s1473_s18  ;;  %v1307_v11 = vpop.eup %1306 }
 0x3c5   :  { %v1309_v12 = vpop.eup %1308  ;;  %v336_v13 = vmul.f32 0.5, %v1307_v11 }
 0x3c6   :  { %v335_v14 = vmul.f32 0.5, %v1309_v12 }
 0x3c7   :  { %v338_v16 = vadd.f32 0.5, %v336_v13 }
 0x3c8   :  { %v337_v19 = vadd.f32 0.5, %v335_v14 }
 0x3c9   :  { %v348_v24 = vmul.f32 %v344_v23, %v338_v16 }
 0x3ca   :  { %v347_v28 = vmul.f32 %v343_v25, %v337_v19 }
 0x434   :  { %v354_v17 = vpop.permute.xlu0 %353 }
 0x435   :  { %v358_v18 = vmul.f32 %v354_v17, %v338_v16 }
 0x436   :  { %v352_v20 = vpop.permute.xlu1 %351 }
 0x437   :  { %363 = vrot.lane.b32.xlu0 %v358_v18, %s1481_s0  ;;  %v357_v22 = vmul.f32 %v352_v20, %v337_v19 }
 0x439   :  { %361 = vrot.lane.b32.xlu1 %v357_v22, %s1481_s0 }
 0x4a9   :  { %v364_v26 = vpop.permute.xlu0 %363 }
 0x4aa   :  { %v1595_v27 = vadd.f32 %v364_v26, %v348_v24 }
 0x4ab   :  { %v362_v29 = vpop.permute.xlu1 %361 }
 0x4ac   :  { %1310 = vtanh.f32 %v1595_v27  ;;  %v367_v30 = vadd.f32 %v362_v29, %v347_v28  ;;  %v466_v9 = vrot.slane %v1595_v27, 7 }
 0x4ae   :  { %1312 = vtanh.f32 %v367_v30  ;;  %v465_v8 = vrot.slane %v367_v30, 7 }
 0x4b9   :  { %v1311_v31 = vpop.eup %1310 }
 0x4ba   :  { %375 = vrot.lane.b32.xlu0 %v1311_v31, %s1473_s18 }
 0x4bb   :  { %v1313_v32 = vpop.eup %1312 }
 0x4bc   :  { %373 = vrot.lane.b32.xlu1 %v1313_v32, %s1473_s18 }
 0x52c   :  { %v376_v33 = vpop.permute.xlu0 %375 }
 0x52d   :  { %v1600_v34 = vmul.f32 %v376_v33, %v338_v16 }
 0x52e   :  { %v374_v35 = vpop.permute.xlu1 %373 }
 0x52f   :  { %v1602_v36 = vmul.f32 %v374_v35, %v337_v19  ;;  %v393_v37 = vpack.c.bf16 %v1600_v34, %v1600_v34 }
 0x531   :  { %v392_v38 = vpack.c.bf16 %v1602_v36, %v1602_v36  ;;  %v397_v40 = vunpack.c.l.b16 %v393_v37 }
 0x533   :  { %v396_v39 = vunpack.c.l.b16 %v392_v38 }
 0x535   :  { %v398_v41 = vrot.slane %v396_v39, 1 }
 0x537   :  { %v399_v42 = vsel %vm277_vm4, %v397_v40, %v398_v41 }
 0x538   :  { %v400_v43 = vpack.c.b16 %v399_v42, %v399_v42 }
 0x53a   :  { %401 = vrot.lane.b32.xlu1 %v400_v43, %s1481_s0 }
 0x5ac   :  { %v402_v44 = vpop.permute.xlu1 %401 }
 0x5ad   :  { %1232 = vmatmul.mubr.msk.bf16.vlgmr.msra.gmra.mxu1 %vm157_vm3, %v402_v44 }
 0x5ae   :  { %1244 = vmatpush3.bf16.msra.mxu1 %v1533_v2  ;;  %1247 = vmatprep.mubr.msk.bf16.mxu1 %vm1480_vm1, %v1479_v0 }
 0x5af   :  { %1245 = vmatprep.subr.bf16.mxu1 %v1479_v0 }
 0x5b2   :  { %1246 = vmatpush3.bf16.msra.mxu1 %v1536_v6 }
 0x5b3   :  { %1259 = vmatprep.subr.bf16.mxu1 %v1479_v0 }
 0x66d   :  { %v440_v45 = vpop.f32.mrf.mxu1 }
 0x66e   :  { %v447_v46 = vrot.slane %v440_v45, 6  ;;  %v448_v47 = vrot.slane %v440_v45, 7 }
 0x66f   :  { %v1233_v48 = vpop.f32.mrf.mxu1 }
 0x670   :  { %v451_v49 = vadd.f32 %v447_v46, %v1563_v21  ;;  %v452_v51 = vadd.f32 %v448_v47, %v1560_v15 }
 0x671   :  { %v443_v52 = vpop.f32.mrf.mxu1 }
 0x672   :  { %1314 = vtanh.f32 %v451_v49  ;;  %v453_v57 = vmul.f32 0.5, %v451_v49  ;;  %v454_v58 = vmul.f32 0.5, %v452_v51 }
 0x673   :  { %1316 = vtanh.f32 %v452_v51  ;;  %v1234_v53 = vpop.f32.mrf.mxu1 }
 0x674   :  { %1318 = vtanh.f32 %v453_v57 }
 0x675   :  { %1320 = vtanh.f32 %v454_v58 }
 0x67f   :  { %v1315_v55 = vpop.eup %1314 }
 0x680   :  { %v1317_v56 = vpop.eup %1316  ;;  %473 = vrot.lane.b32.xlu0 %v1315_v55, %s1473_s18 }
 0x681   :  { %475 = vrot.lane.b32.xlu1 %v1317_v56, %s1473_s18  ;;  %v1319_v59 = vpop.eup %1318 }
 0x682   :  { %v1321_v60 = vpop.eup %1320  ;;  %v457_v61 = vmul.f32 0.5, %v1319_v59 }
 0x683   :  { %v458_v62 = vmul.f32 0.5, %v1321_v60 }
 0x684   :  { %v459_v63 = vadd.f32 0.5, %v457_v61 }
 0x685   :  { %v460_v1 = vadd.f32 0.5, %v458_v62 }
 0x686   :  { %v469_v10 = vmul.f32 %v465_v8, %v459_v63 }
 0x687   :  { %v470_v11 = vmul.f32 %v466_v9, %v460_v1 }
 0x6f2   :  { %v474_v3 = vpop.permute.xlu0 %473 }
 0x6f3   :  { %v476_v4 = vpop.permute.xlu1 %475  ;;  %v479_v5 = vmul.f32 %v474_v3, %v459_v63 }
 0x6f4   :  { %v480_v7 = vmul.f32 %v476_v4, %v460_v1 }
 0x6f5   :  { %483 = vrot.lane.b32.xlu0 %v479_v5, %s1481_s0 }
 0x6f6   :  { %485 = vrot.lane.b32.xlu1 %v480_v7, %s1481_s0 }
 0x767   :  { %v484_v12 = vpop.permute.xlu0 %483 }
 0x768   :  { %v486_v13 = vpop.permute.xlu1 %485  ;;  %v489_v14 = vadd.f32 %v484_v12, %v469_v10 }
 0x769   :  { %v490_v16 = vadd.f32 %v486_v13, %v470_v11 }
 0x76a   :  { %1322 = vtanh.f32 %v489_v14  ;;  %v588_v59 = vrot.slane %v489_v14, 7 }
 0x76b   :  { %1324 = vtanh.f32 %v490_v16  ;;  %v589_v60 = vrot.slane %v490_v16, 7 }
 0x777   :  { %v1323_v17 = vpop.eup %1322 }
 0x778   :  { %v1325_v18 = vpop.eup %1324  ;;  %495 = vrot.lane.b32.xlu0 %v1323_v17, %s1473_s18 }
 0x779   :  { %497 = vrot.lane.b32.xlu1 %v1325_v18, %s1473_s18 }
 0x7ea   :  { %v496_v19 = vpop.permute.xlu0 %495 }
 0x7eb   :  { %v498_v20 = vpop.permute.xlu1 %497  ;;  %v1626_v22 = vmul.f32 %v496_v19, %v459_v63 }
 0x7ec   :  { %v1628_v23 = vmul.f32 %v498_v20, %v460_v1 }
 0x7ed   :  { %v514_v24 = vpack.c.bf16 %v1626_v22, %v1626_v22 }
 0x7ee   :  { %v515_v25 = vpack.c.bf16 %v1628_v23, %v1628_v23 }
 0x7ef   :  { %v518_v26 = vunpack.c.l.b16 %v514_v24 }
 0x7f0   :  { %v519_v27 = vunpack.c.l.b16 %v515_v25 }
 0x7f1   :  { %v520_v28 = vrot.slane %v518_v26, 2 }
 0x7f2   :  { %v521_v29 = vrot.slane %v519_v27, 1 }
 0x7f4   :  { %v522_v30 = vsel %vm277_vm4, %v521_v29, %v520_v28 }
 0x7f5   :  { %v523_v31 = vpack.c.b16 %v522_v30, %v522_v30 }
 0x7f7   :  { %524 = vrot.lane.b32.xlu0 %v523_v31, %s1481_s0 }
 0x869   :  { %v525_v32 = vpop.permute.xlu0 %524 }
 0x86a   :  { %1240 = vmatmul.mubr.msk.bf16.vlgmr.msra.gmra.mxu0 %vm157_vm3, %v525_v32 }
 0x86b   :  { %1252 = vmatpush3.bf16.msra.mxu0 %v1533_v2  ;;  %1255 = vmatprep.mubr.msk.bf16.mxu0 %vm1480_vm1, %v1479_v0 }
 0x86c   :  { %1253 = vmatprep.subr.bf16.mxu0 %v1479_v0 }
 0x86f   :  { %1254 = vmatpush3.bf16.msra.mxu0 %v1536_v6 }
 0x870   :  { %1267 = vmatprep.subr.bf16.mxu0 %v1479_v0 }
 0x92a   :  { %v563_v33 = vpop.f32.mrf.mxu0 }
 0x92b   :  { %v570_v35 = vrot.slane %v563_v33, 5  ;;  %v571_v37 = vrot.slane %v563_v33, 6 }
 0x92c   :  { %v1241_v38 = vpop.f32.mrf.mxu0 }
 0x92d   :  { %v574_v39 = vadd.f32 %v570_v35, %v1563_v21  ;;  %v575_v40 = vadd.f32 %v571_v37, %v1560_v15 }
 0x92e   :  { %v566_v41 = vpop.f32.mrf.mxu0 }
 0x92f   :  { %1326 = vtanh.f32 %v574_v39  ;;  %v576_v45 = vmul.f32 0.5, %v574_v39  ;;  %v577_v46 = vmul.f32 0.5, %v575_v40 }
 0x930   :  { %1328 = vtanh.f32 %v575_v40  ;;  %v1242_v42 = vpop.f32.mrf.mxu0 }
 0x931   :  { %1330 = vtanh.f32 %v576_v45 }
 0x932   :  { %1332 = vtanh.f32 %v577_v46 }
 0x93c   :  { %v1327_v43 = vpop.eup %1326 }
 0x93d   :  { %v1329_v44 = vpop.eup %1328  ;;  %596 = vrot.lane.b32.xlu1 %v1327_v43, %s1473_s18 }
 0x93e   :  { %598 = vrot.lane.b32.xlu0 %v1329_v44, %s1473_s18  ;;  %v1331_v47 = vpop.eup %1330 }
 0x93f   :  { %v1333_v48 = vpop.eup %1332  ;;  %v580_v49 = vmul.f32 0.5, %v1331_v47 }
 0x940   :  { %v581_v51 = vmul.f32 0.5, %v1333_v48 }
 0x941   :  { %v582_v52 = vadd.f32 0.5, %v580_v49 }
 0x942   :  { %v583_v53 = vadd.f32 0.5, %v581_v51 }
 0x943   :  { %v592_v61 = vmul.f32 %v588_v59, %v582_v52 }
 0x944   :  { %v593_v62 = vmul.f32 %v589_v60, %v583_v53 }
 0x9af   :  { %v597_v55 = vpop.permute.xlu1 %596 }
 0x9b0   :  { %v599_v56 = vpop.permute.xlu0 %598  ;;  %v602_v57 = vmul.f32 %v597_v55, %v582_v52 }
 0x9b1   :  { %v603_v58 = vmul.f32 %v599_v56, %v583_v53 }
 0x9b2   :  { %606 = vrot.lane.b32.xlu1 %v602_v57, %s1481_s0 }
 0x9b3   :  { %608 = vrot.lane.b32.xlu0 %v603_v58, %s1481_s0 }
 0xa24   :  { %v607_v63 = vpop.permute.xlu1 %606 }
 0xa25   :  { %v609_v1 = vpop.permute.xlu0 %608  ;;  %v612_v3 = vadd.f32 %v607_v63, %v592_v61 }
 0xa26   :  { %v613_v4 = vadd.f32 %v609_v1, %v593_v62 }
 0xa27   :  { %1334 = vtanh.f32 %v612_v3  ;;  %v711_v49 = vrot.slane %v612_v3, 7 }
 0xa28   :  { %1336 = vtanh.f32 %v613_v4  ;;  %v712_v51 = vrot.slane %v613_v4, 7 }
 0xa34   :  { %v1335_v5 = vpop.eup %1334 }
 0xa35   :  { %v1337_v7 = vpop.eup %1336  ;;  %618 = vrot.lane.b32.xlu1 %v1335_v5, %s1473_s18 }
 0xa36   :  { %620 = vrot.lane.b32.xlu0 %v1337_v7, %s1473_s18 }
 0xaa7   :  { %v619_v8 = vpop.permute.xlu1 %618 }
 0xaa8   :  { %v621_v9 = vpop.permute.xlu0 %620  ;;  %v1651_v10 = vmul.f32 %v619_v8, %v582_v52 }
 0xaa9   :  { %v1653_v11 = vmul.f32 %v621_v9, %v583_v53 }
 0xaaa   :  { %v637_v12 = vpack.c.bf16 %v1651_v10, %v1651_v10 }
 0xaab   :  { %v638_v13 = vpack.c.bf16 %v1653_v11, %v1653_v11 }
 0xaac   :  { %v641_v14 = vunpack.c.l.b16 %v637_v12 }
 0xaad   :  { %v642_v16 = vunpack.c.l.b16 %v638_v13 }
 0xaae   :  { %v643_v17 = vrot.slane %v641_v14, 3 }
 0xaaf   :  { %v644_v18 = vrot.slane %v642_v16, 2 }
 0xab1   :  { %v645_v19 = vsel %vm277_vm4, %v644_v18, %v643_v17 }
 0xab2   :  { %v646_v20 = vpack.c.b16 %v645_v19, %v645_v19 }
 0xab4   :  { %647 = vrot.lane.b32.xlu1 %v646_v20, %s1481_s0 }
 0xb26   :  { %v648_v24 = vpop.permute.xlu1 %647 }
 0xb27   :  { %1248 = vmatmul.mubr.msk.bf16.vlgmr.msra.gmra.mxu1 %vm157_vm3, %v648_v24 }
 0xb28   :  { %1260 = vmatpush3.bf16.msra.mxu1 %v1533_v2  ;;  %1263 = vmatprep.mubr.msk.bf16.mxu1 %vm1480_vm1, %v1479_v0 }
 0xb29   :  { %1261 = vmatprep.subr.bf16.mxu1 %v1479_v0 }
 0xb2c   :  { %1262 = vmatpush3.bf16.msra.mxu1 %v1536_v6 }
 0xbe7   :  { %v686_v25 = vpop.f32.mrf.mxu1 }
 0xbe8   :  { %v693_v26 = vrot.slane %v686_v25, 4  ;;  %v694_v27 = vrot.slane %v686_v25, 5 }
 0xbe9   :  { %v1249_v28 = vpop.f32.mrf.mxu1 }
 0xbea   :  { %v697_v29 = vadd.f32 %v693_v26, %v1563_v21  ;;  %v698_v30 = vadd.f32 %v694_v27, %v1560_v15 }
 0xbeb   :  { %v689_v31 = vpop.f32.mrf.mxu1 }
 0xbec   :  { %1338 = vtanh.f32 %v697_v29  ;;  %v699_v37 = vmul.f32 0.5, %v697_v29  ;;  %v700_v38 = vmul.f32 0.5, %v698_v30 }
 0xbed   :  { %1340 = vtanh.f32 %v698_v30  ;;  %v1250_v32 = vpop.f32.mrf.mxu1 }
 0xbee   :  { %1342 = vtanh.f32 %v699_v37 }
 0xbef   :  { %1344 = vtanh.f32 %v700_v38 }
 0xbf9   :  { %v1339_v33 = vpop.eup %1338 }
 0xbfa   :  { %v1341_v35 = vpop.eup %1340  ;;  %719 = vrot.lane.b32.xlu0 %v1339_v33, %s1473_s18 }
 0xbfb   :  { %721 = vrot.lane.b32.xlu1 %v1341_v35, %s1473_s18  ;;  %v1343_v39 = vpop.eup %1342 }
 0xbfc   :  { %v1345_v40 = vpop.eup %1344  ;;  %v703_v41 = vmul.f32 0.5, %v1343_v39 }
 0xbfd   :  { %v704_v42 = vmul.f32 0.5, %v1345_v40 }
 0xbfe   :  { %v705_v43 = vadd.f32 0.5, %v703_v41 }
 0xbff   :  { %v706_v44 = vadd.f32 0.5, %v704_v42 }
 0xc00   :  { %v715_v52 = vmul.f32 %v711_v49, %v705_v43 }
 0xc01   :  { %v716_v53 = vmul.f32 %v712_v51, %v706_v44 }
 0xc6c   :  { %v720_v45 = vpop.permute.xlu0 %719 }
 0xc6d   :  { %v722_v46 = vpop.permute.xlu1 %721  ;;  %v725_v47 = vmul.f32 %v720_v45, %v705_v43 }
 0xc6e   :  { %v726_v48 = vmul.f32 %v722_v46, %v706_v44 }
 0xc6f   :  { %729 = vrot.lane.b32.xlu0 %v725_v47, %s1481_s0 }
 0xc70   :  { %731 = vrot.lane.b32.xlu1 %v726_v48, %s1481_s0 }
 0xce1   :  { %v730_v55 = vpop.permute.xlu0 %729 }
 0xce2   :  { %v732_v56 = vpop.permute.xlu1 %731  ;;  %v735_v57 = vadd.f32 %v730_v55, %v715_v52 }
 0xce3   :  { %v736_v58 = vadd.f32 %v732_v56, %v716_v53 }
 0xce4   :  { %1346 = vtanh.f32 %v735_v57  ;;  %v834_v40 = vrot.slane %v735_v57, 7 }
 0xce5   :  { %1348 = vtanh.f32 %v736_v58  ;;  %v835_v41 = vrot.slane %v736_v58, 7 }
 0xcf1   :  { %v1347_v59 = vpop.eup %1346 }
 0xcf2   :  { %v1349_v60 = vpop.eup %1348  ;;  %741 = vrot.lane.b32.xlu0 %v1347_v59, %s1473_s18 }
 0xcf3   :  { %743 = vrot.lane.b32.xlu1 %v1349_v60, %s1473_s18 }
 0xd64   :  { %v742_v61 = vpop.permute.xlu0 %741 }
 0xd65   :  { %v744_v62 = vpop.permute.xlu1 %743  ;;  %v1675_v63 = vmul.f32 %v742_v61, %v705_v43 }
 0xd66   :  { %v1677_v1 = vmul.f32 %v744_v62, %v706_v44 }
 0xd67   :  { %v760_v3 = vpack.c.bf16 %v1675_v63, %v1675_v63 }
 0xd68   :  { %v761_v4 = vpack.c.bf16 %v1677_v1, %v1677_v1 }
 0xd69   :  { %v764_v5 = vunpack.c.l.b16 %v760_v3 }
 0xd6a   :  { %v765_v7 = vunpack.c.l.b16 %v761_v4 }
 0xd6b   :  { %v766_v8 = vrot.slane %v764_v5, 4 }
 0xd6c   :  { %v767_v9 = vrot.slane %v765_v7, 3 }
 0xd6e   :  { %v768_v12 = vsel %vm277_vm4, %v767_v9, %v766_v8 }
 0xd6f   :  { %v769_v13 = vpack.c.b16 %v768_v12, %v768_v12 }
 0xd71   :  { %770 = vrot.lane.b32.xlu0 %v769_v13, %s1481_s0 }
 0xde3   :  { %v771_v14 = vpop.permute.xlu0 %770 }
 0xde4   :  { %1256 = vmatmul.mubr.msk.bf16.vlgmr.msra.gmra.mxu0 %vm157_vm3, %v771_v14 }
 0xde5   :  { %1268 = vmatpush3.bf16.msra.mxu0 %v1533_v2  ;;  %1271 = vmatprep.mubr.msk.bf16.mxu0 %vm1480_vm1, %v1479_v0 }
 0xde6   :  { %1269 = vmatprep.subr.bf16.mxu0 %v1479_v0 }
 0xde9   :  { %1270 = vmatpush3.bf16.msra.mxu0 %v1536_v6 }
 0xea4   :  { %v809_v16 = vpop.f32.mrf.mxu0 }
 0xea5   :  { %v816_v17 = vrot.slane %v809_v16, 3  ;;  %v817_v18 = vrot.slane %v809_v16, 4 }
 0xea6   :  { %v1257_v19 = vpop.f32.mrf.mxu0 }
 0xea7   :  { %v820_v20 = vadd.f32 %v816_v17, %v1563_v21  ;;  %v821_v24 = vadd.f32 %v817_v18, %v1560_v15 }
 0xea8   :  { %v812_v25 = vpop.f32.mrf.mxu0 }
 0xea9   :  { %1350 = vtanh.f32 %v820_v20  ;;  %v822_v0 = vmul.f32 0.5, %v820_v20  ;;  %v823_v6 = vmul.f32 0.5, %v821_v24 }
 0xeaa   :  { %1352 = vtanh.f32 %v821_v24  ;;  %v1258_v26 = vpop.f32.mrf.mxu0 }
 0xeab   :  { %1354 = vtanh.f32 %v822_v0 }
 0xeac   :  { %1356 = vtanh.f32 %v823_v6 }
 0xeb6   :  { %v1351_v2 = vpop.eup %1350 }
 0xeb7   :  { %v1353_v27 = vpop.eup %1352  ;;  %842 = vrot.lane.b32.xlu1 %v1351_v2, %s1473_s18 }
 0xeb8   :  { %844 = vrot.lane.b32.xlu0 %v1353_v27, %s1473_s18  ;;  %v1355_v28 = vpop.eup %1354 }
 0xeb9   :  { %v1357_v29 = vpop.eup %1356  ;;  %v826_v30 = vmul.f32 0.5, %v1355_v28 }
 0xeba   :  { %v827_v31 = vmul.f32 0.5, %v1357_v29 }
 0xebb   :  { %v828_v32 = vadd.f32 0.5, %v826_v30 }
 0xebc   :  { %v829_v33 = vadd.f32 0.5, %v827_v31 }
 0xebd   :  { %v838_v42 = vmul.f32 %v834_v40, %v828_v32 }
 0xebe   :  { %v839_v43 = vmul.f32 %v835_v41, %v829_v33 }
 0xf29   :  { %v843_v35 = vpop.permute.xlu1 %842 }
 0xf2a   :  { %v845_v37 = vpop.permute.xlu0 %844  ;;  %v848_v38 = vmul.f32 %v843_v35, %v828_v32 }
 0xf2b   :  { %v849_v39 = vmul.f32 %v845_v37, %v829_v33 }
 0xf2c   :  { %852 = vrot.lane.b32.xlu1 %v848_v38, %s1481_s0 }
 0xf2d   :  { %854 = vrot.lane.b32.xlu0 %v849_v39, %s1481_s0 }
 0xf9e   :  { %v853_v44 = vpop.permute.xlu1 %852 }
 0xf9f   :  { %v855_v45 = vpop.permute.xlu0 %854  ;;  %v858_v46 = vadd.f32 %v853_v44, %v838_v42 }
 0xfa0   :  { %v859_v47 = vadd.f32 %v855_v45, %v839_v43 }
 0xfa1   :  { %1358 = vtanh.f32 %v858_v46  ;;  %v957_v31 = vrot.slane %v858_v46, 7 }
 0xfa2   :  { %1360 = vtanh.f32 %v859_v47 }
 0xfae   :  { %v1359_v48 = vpop.eup %1358 }
 0xfaf   :  { %v1361_v49 = vpop.eup %1360  ;;  %864 = vrot.lane.b32.xlu1 %v1359_v48, %s1473_s18 }
 0xfb0   :  { %866 = vrot.lane.b32.xlu0 %v1361_v49, %s1473_s18 }
0x1021   :  { %v865_v51 = vpop.permute.xlu1 %864 }
0x1022   :  { %v867_v52 = vpop.permute.xlu0 %866  ;;  %v1699_v53 = vmul.f32 %v865_v51, %v828_v32  ;;  %v958_v32 = vrot.slane %v859_v47, 7 }
0x1023   :  { %v1701_v55 = vmul.f32 %v867_v52, %v829_v33 }
0x1024   :  { %v883_v56 = vpack.c.bf16 %v1699_v53, %v1699_v53 }
0x1025   :  { %v884_v57 = vpack.c.bf16 %v1701_v55, %v1701_v55 }
0x1026   :  { %v887_v58 = vunpack.c.l.b16 %v883_v56 }
0x1027   :  { %v888_v59 = vunpack.c.l.b16 %v884_v57 }
0x1028   :  { %v889_v60 = vrot.slane %v887_v58, 5 }
0x1029   :  { %v890_v61 = vrot.slane %v888_v59, 4 }
0x102b   :  { %v891_v62 = vsel %vm277_vm4, %v890_v61, %v889_v60 }
0x102c   :  { %v892_v3 = vpack.c.b16 %v891_v62, %v891_v62 }
0x102e   :  { %893 = vrot.lane.b32.xlu1 %v892_v3, %s1481_s0 }
0x10a0   :  { %v894_v4 = vpop.permute.xlu1 %893 }
0x10a1   :  { %1264 = vmatmul.mubr.msk.bf16.vlgmr.msra.gmra.mxu1 %vm157_vm3, %v894_v4 }
0x1161   :  { %v932_v5 = vpop.f32.mrf.mxu1 }
0x1162   :  { %v939_v7 = vrot.slane %v932_v5, 2  ;;  %v940_v8 = vrot.slane %v932_v5, 3 }
0x1163   :  { %v1265_v9 = vpop.f32.mrf.mxu1 }
0x1164   :  { %v943_v12 = vadd.f32 %v939_v7, %v1563_v21  ;;  %v944_v13 = vadd.f32 %v940_v8, %v1560_v15 }
0x1165   :  { %v935_v14 = vpop.f32.mrf.mxu1 }
0x1166   :  { %1362 = vtanh.f32 %v943_v12  ;;  %v945_v19 = vmul.f32 0.5, %v943_v12  ;;  %v946_v20 = vmul.f32 0.5, %v944_v13 }
0x1167   :  { %1364 = vtanh.f32 %v944_v13  ;;  %v1266_v16 = vpop.f32.mrf.mxu1 }
0x1168   :  { %1366 = vtanh.f32 %v945_v19 }
0x1169   :  { %1368 = vtanh.f32 %v946_v20 }
0x1173   :  { %v1363_v17 = vpop.eup %1362 }
0x1174   :  { %v1365_v18 = vpop.eup %1364  ;;  %965 = vrot.lane.b32.xlu0 %v1363_v17, %s1473_s18 }
0x1175   :  { %967 = vrot.lane.b32.xlu1 %v1365_v18, %s1473_s18  ;;  %v1367_v24 = vpop.eup %1366 }
0x1176   :  { %v1369_v25 = vpop.eup %1368  ;;  %v949_v26 = vmul.f32 0.5, %v1367_v24 }
0x1177   :  { %v950_v2 = vmul.f32 0.5, %v1369_v25 }
0x1178   :  { %v951_v27 = vadd.f32 0.5, %v949_v26 }
0x1179   :  { %v952_v0 = vadd.f32 0.5, %v950_v2 }
0x117a   :  { %v961_v33 = vmul.f32 %v957_v31, %v951_v27 }
0x117b   :  { %v962_v35 = vmul.f32 %v958_v32, %v952_v0 }
0x11e6   :  { %v966_v6 = vpop.permute.xlu0 %965 }
0x11e7   :  { %v968_v28 = vpop.permute.xlu1 %967  ;;  %v971_v29 = vmul.f32 %v966_v6, %v951_v27 }
0x11e8   :  { %v972_v30 = vmul.f32 %v968_v28, %v952_v0 }
0x11e9   :  { %975 = vrot.lane.b32.xlu0 %v971_v29, %s1481_s0 }
0x11ea   :  { %977 = vrot.lane.b32.xlu1 %v972_v30, %s1481_s0 }
0x125b   :  { %v976_v37 = vpop.permute.xlu0 %975 }
0x125c   :  { %v978_v38 = vpop.permute.xlu1 %977  ;;  %v981_v39 = vadd.f32 %v976_v37, %v961_v33 }
0x125d   :  { %v982_v40 = vadd.f32 %v978_v38, %v962_v35 }
0x125e   :  { %1370 = vtanh.f32 %v981_v39  ;;  %v1080_v2 = vrot.slane %v981_v39, 7 }
0x125f   :  { %1372 = vtanh.f32 %v982_v40 }
0x126b   :  { %v1371_v41 = vpop.eup %1370 }
0x126c   :  { %v1373_v42 = vpop.eup %1372  ;;  %987 = vrot.lane.b32.xlu0 %v1371_v41, %s1473_s18 }
0x126d   :  { %989 = vrot.lane.b32.xlu1 %v1373_v42, %s1473_s18 }
0x12de   :  { %v988_v43 = vpop.permute.xlu0 %987 }
0x12df   :  { %v990_v44 = vpop.permute.xlu1 %989  ;;  %v1718_v45 = vmul.f32 %v988_v43, %v951_v27  ;;  %v1081_v27 = vrot.slane %v982_v40, 7 }
0x12e0   :  { %v1720_v46 = vmul.f32 %v990_v44, %v952_v0 }
0x12e1   :  { %v1006_v47 = vpack.c.bf16 %v1718_v45, %v1718_v45 }
0x12e2   :  { %v1007_v48 = vpack.c.bf16 %v1720_v46, %v1720_v46 }
0x12e3   :  { %v1010_v49 = vunpack.c.l.b16 %v1006_v47 }
0x12e4   :  { %v1011_v51 = vunpack.c.l.b16 %v1007_v48 }
0x12e5   :  { %v1012_v52 = vrot.slane %v1010_v49, 6 }
0x12e6   :  { %v1013_v56 = vrot.slane %v1011_v51, 5 }
0x12e8   :  { %v1014_v57 = vsel %vm277_vm4, %v1013_v56, %v1012_v52 }
0x12e9   :  { %v1015_v58 = vpack.c.b16 %v1014_v57, %v1014_v57 }
0x12eb   :  { %1016 = vrot.lane.b32.xlu0 %v1015_v58, %s1481_s0 }
0x135d   :  { %v1017_v59 = vpop.permute.xlu0 %1016 }
0x135e   :  { %1272 = vmatmul.mubr.msk.bf16.vlgmr.msra.gmra.mxu0 %vm157_vm3, %v1017_v59 }
0x141e   :  { %v1055_v60 = vpop.f32.mrf.mxu0 }
0x141f   :  { %v1062_v61 = vrot.slane %v1055_v60, 1  ;;  %v1063_v62 = vrot.slane %v1055_v60, 2 }
0x1420   :  { %v1273_v3 = vpop.f32.mrf.mxu0 }
0x1421   :  { %v1066_v4 = vadd.f32 %v1062_v61, %v1563_v21  ;;  %v1067_v5 = vadd.f32 %v1063_v62, %v1560_v15 }
0x1422   :  { %v1058_v7 = vpop.f32.mrf.mxu0 }
0x1423   :  { %1374 = vtanh.f32 %v1066_v4  ;;  %v1068_v13 = vmul.f32 0.5, %v1066_v4  ;;  %v1069_v14 = vmul.f32 0.5, %v1067_v5 }
0x1424   :  { %1376 = vtanh.f32 %v1067_v5  ;;  %v1274_v8 = vpop.f32.mrf.mxu0 }
0x1425   :  { %1378 = vtanh.f32 %v1068_v13 }
0x1426   :  { %1380 = vtanh.f32 %v1069_v14 }
0x1430   :  { %v1375_v9 = vpop.eup %1374 }
0x1431   :  { %v1377_v12 = vpop.eup %1376  ;;  %1088 = vrot.lane.b32.xlu0 %v1375_v9, %s1473_s18 }
0x1432   :  { %1090 = vrot.lane.b32.xlu1 %v1377_v12, %s1473_s18  ;;  %v1379_v16 = vpop.eup %1378 }
0x1433   :  { %v1381_v17 = vpop.eup %1380  ;;  %v1072_v18 = vmul.f32 0.5, %v1379_v16 }
0x1434   :  { %v1073_v21 = vmul.f32 0.5, %v1381_v17 }
0x1435   :  { %v1074_v19 = vadd.f32 0.5, %v1072_v18 }
0x1436   :  { %v1075_v15 = vadd.f32 0.5, %v1073_v21 }
0x1437   :  { %v1084_v0 = vmul.f32 %v1080_v2, %v1074_v19 }
0x1438   :  { %v1085_v6 = vmul.f32 %v1081_v27, %v1075_v15 }
0x14a3   :  { %v1089_v20 = vpop.permute.xlu0 %1088 }
0x14a4   :  { %v1091_v24 = vpop.permute.xlu1 %1090  ;;  %v1094_v25 = vmul.f32 %v1089_v20, %v1074_v19 }
0x14a5   :  { %v1095_v26 = vmul.f32 %v1091_v24, %v1075_v15 }
0x14a6   :  { %1098 = vrot.lane.b32.xlu0 %v1094_v25, %s1481_s0 }
0x14a7   :  { %1100 = vrot.lane.b32.xlu1 %v1095_v26, %s1481_s0 }
0x1518   :  { %v1099_v28 = vpop.permute.xlu0 %1098 }
0x1519   :  { %v1101_v29 = vpop.permute.xlu1 %1100  ;;  %v1104_v30 = vadd.f32 %v1099_v28, %v1084_v0 }
0x151a   :  { %v1105_v31 = vadd.f32 %v1101_v29, %v1085_v6 }
0x151b   :  { %1382 = vtanh.f32 %v1104_v30 }
0x151c   :  { %1384 = vtanh.f32 %v1105_v31 }
0x1528   :  { %v1383_v32 = vpop.eup %1382 }
0x1529   :  { %v1385_v33 = vpop.eup %1384  ;;  %1110 = vrot.lane.b32.xlu0 %v1383_v32, %s1473_s18 }
0x152a   :  { %1112 = vrot.lane.b32.xlu1 %v1385_v33, %s1473_s18 }
0x152d   :  { %263 = vrot.lane.b32.xlu0 %v1572_v50, %s1481_s0 }
0x152e   :  { %261 = vrot.lane.b32.xlu1 %v1576_v54, %s1481_s0 }
0x1531   :  { %385 = vrot.lane.b32.xlu0 %v1600_v34, %s1481_s0 }
0x1532   :  { %383 = vrot.lane.b32.xlu1 %v1602_v36, %s1481_s0 }
0x1535   :  { %507 = vrot.lane.b32.xlu0 %v1628_v23, %s1481_s0 }
0x1536   :  { %505 = vrot.lane.b32.xlu1 %v1626_v22, %s1481_s0 }
0x1539   :  { %630 = vrot.lane.b32.xlu0 %v1653_v11, %s1481_s0 }
0x153a   :  { %628 = vrot.lane.b32.xlu1 %v1651_v10, %s1481_s0 }
0x153d   :  { %753 = vrot.lane.b32.xlu0 %v1677_v1, %s1481_s0 }
0x153e   :  { %751 = vrot.lane.b32.xlu1 %v1675_v63, %s1481_s0  ;;  %v1137_v63 = vrot.slane %v1105_v31, 7 }
0x1541   :  { %876 = vrot.lane.b32.xlu0 %v1701_v55, %s1481_s0 }
0x1542   :  { %874 = vrot.lane.b32.xlu1 %v1699_v53, %s1481_s0 }
0x1545   :  { %999 = vrot.lane.b32.xlu0 %v1720_v46, %s1481_s0 }
0x1546   :  { %997 = vrot.lane.b32.xlu1 %v1718_v45, %s1481_s0 }
0x159b   :  { %v1111_v50 = vpop.permute.xlu0 %1110 }
0x159c   :  { %v1113_v54 = vpop.permute.xlu1 %1112  ;;  %v1116_v34 = vmul.f32 %v1111_v50, %v1074_v19 }
0x159d   :  { %v1117_v36 = vmul.f32 %v1113_v54, %v1075_v15 }
0x159e   :  { %1120 = vrot.lane.b32.xlu1 %v1116_v34, %s1481_s0 }
0x159f   :  { %1122 = vrot.lane.b32.xlu0 %v1117_v36, %s1481_s0  ;;  %v264_v22 = vpop.permute.xlu0 %263  ;;  %v1129_v23 = vrot.slane %v1117_v36, 7 }
0x15a0   :  { %v262_v10 = vpop.permute.xlu1 %261  ;;  %269 = vst.msk [vmem:[#allocation10 + $0x8] sm:$0x1] %vm267_vm5, %v264_v22 }
0x15a1   :  { %268 = vst.msk [vmem:[#allocation10] sm:$0x1] %vm267_vm5, %v262_v10 }
0x15a2   :  { %1130 = vrot.lane.b32.xlu1 %v1129_v23, %s1481_s0 }
0x15a3   :  { %1138 = vrot.lane.b32.xlu0 %v1104_v30, %s1482_s3  ;;  %v386_v11 = vpop.permute.xlu0 %385 }
0x15a4   :  { %v384_v1 = vpop.permute.xlu1 %383  ;;  %391 = vst.msk [vmem:[#allocation10 + $0x8] sm:$0x2] %vm389_vm6, %v386_v11 }
0x15a5   :  { %390 = vst.msk [vmem:[#allocation10] sm:$0x2] %vm389_vm6, %v384_v1 }
0x15a6   :  { %1140 = vrot.lane.b32.xlu1 %v1137_v63, %s1482_s3 }
0x15a7   :  { %v508_v53 = vpop.permute.xlu0 %507 }
0x15a8   :  { %v506_v55 = vpop.permute.xlu1 %505  ;;  %513 = vst.msk [vmem:[#allocation10 + $0x8] sm:$0x4] %vm511_vm7, %v508_v53 }
0x15a9   :  { %512 = vst.msk [vmem:[#allocation10] sm:$0x4] %vm511_vm7, %v506_v55 }
0x15ab   :  { %v631_v35 = vpop.permute.xlu0 %630 }
0x15ac   :  { %v629_v37 = vpop.permute.xlu1 %628  ;;  %636 = vst.msk [vmem:[#allocation10 + $0x8] sm:$0x8] %vm634_vm8, %v631_v35 }
0x15ad   :  { %635 = vst.msk [vmem:[#allocation10] sm:$0x8] %vm634_vm8, %v629_v37 }
0x15af   :  { %v754_v38 = vpop.permute.xlu0 %753 }
0x15b0   :  { %v752_v39 = vpop.permute.xlu1 %751  ;;  %759 = vst.msk [vmem:[#allocation10 + $0x8] sm:$0x10] %vm757_vm9, %v754_v38 }
0x15b1   :  { %758 = vst.msk [vmem:[#allocation10] sm:$0x10] %vm757_vm9, %v752_v39 }
0x15b3   :  { %v877_v40 = vpop.permute.xlu0 %876 }
0x15b4   :  { %v875_v41 = vpop.permute.xlu1 %874  ;;  %882 = vst.msk [vmem:[#allocation10 + $0x8] sm:$0x20] %vm880_vm10, %v877_v40 }
0x15b5   :  { %881 = vst.msk [vmem:[#allocation10] sm:$0x20] %vm880_vm10, %v875_v41 }
0x15b7   :  { %v1000_v42 = vpop.permute.xlu0 %999 }
0x15b8   :  { %v998_v43 = vpop.permute.xlu1 %997  ;;  %1005 = vst.msk [vmem:[#allocation10 + $0x8] sm:$0x40] %vm1003_vm11, %v1000_v42 }
0x15b9   :  { %1004 = vst.msk [vmem:[#allocation10] sm:$0x40] %vm1003_vm11, %v998_v43 }
0x1610   :  { %v1121_v44 = vpop.permute.xlu1 %1120 }
0x1611   :  { %1127 = vst.msk [vmem:[#allocation10] sm:$0x80] %vm1126_vm12, %v1121_v44  ;;  %1133 = vst.msk [vmem:[#allocation2 - $0x7] sm:$0x80] %vm1126_vm12, %v1121_v44  ;;  %v1123_v45 = vpop.permute.xlu0 %1122 }
0x1612   :  { %1128 = vst.msk [vmem:[#allocation10 + $0x8] sm:$0x80] %vm1126_vm12, %v1123_v45 }
0x1613   :  { %1457 = shalt.err (!%p1454_p5)
}
0x1614   :  { %1157 = dma.vmem_to_hbm [thread:$0]  %s1152_s9, 256, %s1786_s4, [#allocation6], %s1476_s25, %s1476_s25, %s1477_s26   ;;  %v1131_v46 = vpop.permute.xlu1 %1130 }
0x1615   :  { %1134 = vst.msk [vmem:[#allocation2 + $0x1] sm:$0x1] %vm267_vm5, %v1131_v46  ;;  %v1139_v47 = vpop.permute.xlu0 %1138 }
0x1616   :  { %1144 = vst.msk [vmem:[#allocation3 - $0x7] sm:$0x80] %vm1126_vm12, %v1139_v47 }
0x1618   :  { %v1141_v48 = vpop.permute.xlu1 %1140 }
0x1619   :  { %1145 = vst.msk [vmem:[#allocation3 + $0x1] sm:$0x1] %vm267_vm5, %v1141_v48 }
0x161a   :  { %1470 = dma.done.wait [#allocation6], 256  }
0x161b   :  { %1471 = vsyncadd [#allocation6], 4294967040 }
0x161c   :  { %1161 = vsyncpa [#allocation5], 1 }
0x161d   :  { %1162 = vsyncpa [#allocation8], 1 }
0x161e   :  { %1163 = vsyncpa [#allocation6], 1 }

</bundles_post_ra>
